<compile_context>
chip_gen: v7x
topology: tpu7x:2x2x1
jax: 0.10.0
libtpu: 0.0.40
codegen_flags: <defaults>
</compile_context>

<pallas_src>
import functools

import jax
import jax.numpy as jnp
from jax.experimental import pallas as pl
from jax.experimental.pallas import tpu as pltpu

LANE = 128
SUBLANE = 8
OPERAND_DTYPE = jnp.bfloat16


def _round_up(x, m):
    return (x + m - 1) // m * m


# -----------------------------------------------------------------------------
# The single fused kernel
# -----------------------------------------------------------------------------
def _fused_detector_kernel(cols_ref, wc_ref, bc_ref, w6_ref, b6_ref,
                           w7_ref, b7_ref, wh_ref, bh_ref, o_ref,
                           *, c_real, out_rows):
    # 1) stem conv lowered to one MXU matmul over the per-image im2col block.
    #    feat[p, c] = ReLU(cols[p, :] @ Wc[:, c] + bc[c]);  p = spatial pos, c = out chan.
    feat = jnp.dot(cols_ref[0], wc_ref[...], preferred_element_type=jnp.float32)
    feat = jnp.maximum(feat + bc_ref[...], 0.0)              # (P, Op) f32, stays in VMEM

    # 2) fc6 over the NCHW-flattened feature map WITHOUT materializing the flatten
    #    (a (P, C) -> (1, P*C) reshape would be a sublane->lane relayout):
    #        h6[r] = sum_c sum_p feat[p, c] * W6[c, p, r]
    #    implemented as c_real broadcast-MACs (VPU) + one sublane reduction (XLU).
    #    Only real channels are visited, so padded output channels cost nothing.
    acc = feat[:, 0:1] * w6_ref[0]
    for c in range(1, c_real):
        acc = acc + feat[:, c:c + 1] * w6_ref[c]             # (P, Rp) f32
    h = jnp.sum(acc, axis=0, keepdims=True) + b6_ref[...]    # (1, Rp)
    h = jnp.broadcast_to(h, (out_rows, h.shape[-1]))         # M=8 so head dots use full sublanes
    h = jnp.maximum(h, 0.0).astype(w7_ref.dtype)

    # 3) fc7 + fused (cls_score || bbox_pred) predictor: two more MXU dots, f32 epilogue.
    h = jnp.dot(h, w7_ref[...], preferred_element_type=jnp.float32) + b7_ref[...]
    h = jnp.maximum(h, 0.0).astype(wh_ref.dtype)
    out = jnp.dot(h, wh_ref[...], preferred_element_type=jnp.float32) + bh_ref[...]
    o_ref[0] = out                                           # (out_rows, Nhp); rows identical


def fused_detector_head(cols, wc, bc, w6, b6, w7, b7, wh, bh, *, out_rows=SUBLANE):
    """cols: (B, P, CKKp) bf16; weights bf16/f32 pre-padded.  Returns (B, out_rows, Nhp) f32."""
    B, P, CKKp = cols.shape
    CKKp2, Op = wc.shape
    assert CKKp == CKKp2
    c_real, P2, Rp = w6.shape
    assert P2 == P
    Nhp = wh.shape[1]

    kernel = functools.partial(_fused_detector_kernel, c_real=c_real, out_rows=out_rows)

    return pl.pallas_call(
        kernel,
        out_shape=jax.ShapeDtypeStruct((B, out_rows, Nhp), jnp.float32),
        grid_spec=pltpu.PrefetchScalarGridSpec(
            num_scalar_prefetch=0,
            grid=(B,),                                              # one image per step
            in_specs=[
                pl.BlockSpec((1, P, CKKp), lambda b: (b, 0, 0)),    # per-image im2col block
                pl.BlockSpec((CKKp, Op), lambda b: (0, 0)),         # stem weight (resident)
                pl.BlockSpec((1, Op), lambda b: (0, 0)),
                pl.BlockSpec((c_real, P, Rp), lambda b: (0, 0, 0)),  # fc6 weight (resident)
                pl.BlockSpec((1, Rp), lambda b: (0, 0)),
                pl.BlockSpec((Rp, Rp), lambda b: (0, 0)),           # fc7
                pl.BlockSpec((1, Rp), lambda b: (0, 0)),
                pl.BlockSpec((Rp, Nhp), lambda b: (0, 0)),          # cls_score || bbox_pred
                pl.BlockSpec((1, Nhp), lambda b: (0, 0)),
            ],
            out_specs=pl.BlockSpec((1, out_rows, Nhp), lambda b: (b, 0, 0)),
        ),
        compiler_params=pltpu.CompilerParams(
            dimension_semantics=("parallel",),   # v7x: one image per TensorCore
        ),
    )(cols, wc, bc, w6, b6, w7, b7, wh, bh)


# -----------------------------------------------------------------------------
# im2col (XLA-side glue; trivially fused under jit at these sizes)
# -----------------------------------------------------------------------------
def _im2col(x, kh, kw, stride, pad):
    """x: (B, C, H, W) -> cols: (B, Ho*Wo, C*kh*kw) with K ordered (c, i, j)."""
    B, C, H, W = x.shape
    xp = jnp.pad(x, ((0, 0), (0, 0), (pad, pad), (pad, pad)))
    Ho = (H + 2 * pad - kh) // stride + 1
    Wo = (W + 2 * pad - kw) // stride + 1
    patches = []
    for i in range(kh):
        for j in range(kw):
            patches.append(xp[:, :, i:i + stride * Ho:stride, j:j + stride * Wo:stride])
    cols = jnp.stack(patches, axis=2)                  # (B, C, kh*kw, Ho, Wo)
    cols = cols.reshape(B, C * kh * kw, Ho * Wo)
    cols = cols.transpose(0, 2, 1)                     # (B, P, C*kh*kw)
    return cols, Ho, Wo


# -----------------------------------------------------------------------------
# Deterministic parameter init (synthetic ObjectDetectionModel slice)
# -----------------------------------------------------------------------------
def init_params(key, in_ch=3, stem_ch=16, feat_hw=8, rep_size=64, num_classes=5):
    ks = jax.random.split(key, 10)
    s = 0.05
    flat = stem_ch * feat_hw * feat_hw
    return {
        "stem_w": jax.random.normal(ks[0], (stem_ch, in_ch, 7, 7), jnp.float32) * s,
        "stem_b": jax.random.normal(ks[1], (stem_ch,), jnp.float32) * s,
        "fc6_w": jax.random.normal(ks[2], (flat, rep_size), jnp.float32) * s,
        "fc6_b": jax.random.normal(ks[3], (rep_size,), jnp.float32) * s,
        "fc7_w": jax.random.normal(ks[4], (rep_size, rep_size), jnp.float32) * s,
        "fc7_b": jax.random.normal(ks[5], (rep_size,), jnp.float32) * s,
        # FastRCNNPredictor(in_features=rep_size, num_classes)
        "cls_w": jax.random.normal(ks[6], (rep_size, num_classes), jnp.float32) * s,
        "cls_b": jax.random.normal(ks[7], (num_classes,), jnp.float32) * s,
        "box_w": jax.random.normal(ks[8], (rep_size, num_classes * 4), jnp.float32) * s,
        "box_b": jax.random.normal(ks[9], (num_classes * 4,), jnp.float32) * s,
    }


def prepare_params(params, *, num_classes):
    """Pad / reshape / concatenate / cast every weight ONCE (constants at run time)."""
    stem_w = params["stem_w"]                                  # (O, Cin, 7, 7)
    O, Cin, KH, KW = stem_w.shape
    CKK = Cin * KH * KW
    CKKp = _round_up(CKK, LANE)
    Op = _round_up(O, LANE)
    wc = stem_w.reshape(O, CKK).T                              # (CKK, O), K ordered (c, i, j)
    wc = jnp.pad(wc, ((0, CKKp - CKK), (0, Op - O))).astype(OPERAND_DTYPE)
    bc = jnp.pad(params["stem_b"][None, :], ((0, 0), (0, Op - O))).astype(jnp.float32)

    fc6_w = params["fc6_w"]                                    # (O*P, R), NCHW-flat rows
    flat, R = fc6_w.shape
    P = flat // O                                              # spatial positions (Ho*Wo)
    Rp = _round_up(R, LANE)
    w6 = fc6_w.reshape(O, P, R)                                # [chan, pos, r] — no permutation
    w6 = jnp.pad(w6, ((0, 0), (0, 0), (0, Rp - R))).astype(jnp.float32)
    b6 = jnp.pad(params["fc6_b"][None, :], ((0, 0), (0, Rp - R))).astype(jnp.float32)

    w7 = jnp.pad(params["fc7_w"], ((0, Rp - R), (0, Rp - R))).astype(OPERAND_DTYPE)
    b7 = jnp.pad(params["fc7_b"][None, :], ((0, 0), (0, Rp - R))).astype(jnp.float32)

    n_out = num_classes + num_classes * 4
    Nhp = _round_up(n_out, LANE)
    wh = jnp.concatenate([params["cls_w"], params["box_w"]], axis=1)   # cls || box
    wh = jnp.pad(wh, ((0, Rp - R), (0, Nhp - n_out))).astype(OPERAND_DTYPE)
    bh = jnp.concatenate([params["cls_b"], params["box_b"]])[None, :]
    bh = jnp.pad(bh, ((0, 0), (0, Nhp - n_out))).astype(jnp.float32)

    return {"wc": wc, "bc": bc, "w6": w6, "b6": b6,
            "w7": w7, "b7": b7, "wh": wh, "bh": bh}


# -----------------------------------------------------------------------------
# Jitted forward + pure-JAX f32 reference
# -----------------------------------------------------------------------------
def make_forward(*, num_classes):
    @jax.jit
    def forward(prep, x):
        # backbone stem patches (XLA glue; single fused pass over a tiny image)
        cols, Ho, Wo = _im2col(x, 7, 7, 2, 3)                       # (B, P, CKK) f32
        CKK = cols.shape[-1]
        CKKp = prep["wc"].shape[0]
        assert Ho * Wo == prep["w6"].shape[1]
        cols = jnp.pad(cols, ((0, 0), (0, 0), (0, CKKp - CKK))).astype(OPERAND_DTYPE)

        # ONE fused Pallas kernel: conv + ReLU + fc6 + fc7 + predictor
        head = fused_detector_head(cols, prep["wc"], prep["bc"], prep["w6"], prep["b6"],
                                   prep["w7"], prep["b7"], prep["wh"], prep["bh"])
        head = head[:, 0, :]                                        # (B, Nhp)
        class_logits = head[:, :num_classes]
        box_regression = head[:, num_classes:num_classes + 4 * num_classes]
        # TODO(synk): eval-mode softmax, box decoding and per-class NMS omitted.
        return {"class_logits": class_logits, "box_regression": box_regression}

    return forward


def reference_forward(params, x):
    """Pure-JAX f32 reference of the same structural slice (tolerance check only)."""
    feat = jax.lax.conv_general_dilated(
        x, params["stem_w"], window_strides=(2, 2), padding=((3, 3), (3, 3)),
        dimension_numbers=("NCHW", "OIHW", "NCHW"))
    feat = jax.nn.relu(feat + params["stem_b"][None, :, None, None])
    flat = feat.reshape(x.shape[0], -1)                             # NCHW flatten
    h = jax.nn.relu(flat @ params["fc6_w"] + params["fc6_b"])
    h = jax.nn.relu(h @ params["fc7_w"] + params["fc7_b"])
    cls = h @ params["cls_w"] + params["cls_b"]
    box = h @ params["box_w"] + params["box_b"]
    return cls, box


if __name__ == "__main__":
    key = jax.random.PRNGKey(0)
    pkey, xkey = jax.random.split(key)

    num_classes = 5
    in_ch, stem_ch, feat_hw, rep_size = 3, 16, 8, 64

    params = init_params(pkey, in_ch=in_ch, stem_ch=stem_ch, feat_hw=feat_hw,
                         rep_size=rep_size, num_classes=num_classes)
    prep = prepare_params(params, num_classes=num_classes)
    forward = make_forward(num_classes=num_classes)

    # NCHW image batch, matching the PyTorch module's expected input.
    x = jax.random.normal(xkey, (2, in_ch, 16, 16), jnp.float32)

    out = forward(prep, x)
    out = jax.block_until_ready(out)

    assert out["class_logits"].shape == (2, num_classes)
    assert out["box_regression"].shape == (2, 4 * num_classes)
    assert jnp.all(jnp.isfinite(out["class_logits"]))
    assert jnp.all(jnp.isfinite(out["box_regression"]))

    # tolerance-asserted pure-JAX reference (bf16 MXU operands -> small drift expected)
    ref_cls, ref_box = reference_forward(params, x)
    err = max(float(jnp.max(jnp.abs(out["class_logits"] - ref_cls))),
              float(jnp.max(jnp.abs(out["box_regression"] - ref_box))))
    assert err < 3e-2, f"max abs error vs f32 reference: {err}"

    print("KERNEL_OK")
</pallas_src>

<mosaic_0001>
module attributes {stable_mosaic.version = 11 : i64} {
  func.func @_fused_detector_kernel(%arg0: i32, %arg1: memref<1x64x256xbf16, #tpu.memory_space<vmem>>, %arg2: memref<256x128xbf16, #tpu.memory_space<vmem>>, %arg3: memref<1x128xf32, #tpu.memory_space<vmem>>, %arg4: memref<16x64x128xf32, #tpu.memory_space<vmem>>, %arg5: memref<1x128xf32, #tpu.memory_space<vmem>>, %arg6: memref<128x128xbf16, #tpu.memory_space<vmem>>, %arg7: memref<1x128xf32, #tpu.memory_space<vmem>>, %arg8: memref<128x128xbf16, #tpu.memory_space<vmem>>, %arg9: memref<1x128xf32, #tpu.memory_space<vmem>>, %arg10: memref<1x8x128xf32, #tpu.memory_space<vmem>>) attributes {dimension_semantics = [#tpu.dimension_semantics<parallel>], iteration_bounds = array<i64: 2>, scalar_prefetch = 0 : i64, scratch_operands = 0 : i64, tpu.core_type = #tpu.core_type<tc>, window_params = [{transform_indices = @transform_0, window_bounds = array<i64: 1, 64, 256>}, {pipeline_mode = #tpu.pipeline_mode<synchronous>, transform_indices = @transform_1, window_bounds = array<i64: 256, 128>}, {pipeline_mode = #tpu.pipeline_mode<synchronous>, transform_indices = @transform_2, window_bounds = array<i64: 1, 128>}, {pipeline_mode = #tpu.pipeline_mode<synchronous>, transform_indices = @transform_3, window_bounds = array<i64: 16, 64, 128>}, {pipeline_mode = #tpu.pipeline_mode<synchronous>, transform_indices = @transform_4, window_bounds = array<i64: 1, 128>}, {pipeline_mode = #tpu.pipeline_mode<synchronous>, transform_indices = @transform_5, window_bounds = array<i64: 128, 128>}, {pipeline_mode = #tpu.pipeline_mode<synchronous>, transform_indices = @transform_6, window_bounds = array<i64: 1, 128>}, {pipeline_mode = #tpu.pipeline_mode<synchronous>, transform_indices = @transform_7, window_bounds = array<i64: 128, 128>}, {pipeline_mode = #tpu.pipeline_mode<synchronous>, transform_indices = @transform_8, window_bounds = array<i64: 1, 128>}, {transform_indices = @transform_9, window_bounds = array<i64: 1, 8, 128>}]} {
    %c0 = arith.constant 0 : index
    %c0_0 = arith.constant 0 : index
    %c0_1 = arith.constant 0 : index
    %0 = vector.load %arg1[%c0, %c0_0, %c0_1] : memref<1x64x256xbf16, #tpu.memory_space<vmem>>, vector<1x64x256xbf16>
    %1 = vector.shape_cast %0 : vector<1x64x256xbf16> to vector<64x256xbf16>
    %c0_2 = arith.constant 0 : index
    %c0_3 = arith.constant 0 : index
    %2 = vector.load %arg2[%c0_2, %c0_3] : memref<256x128xbf16, #tpu.memory_space<vmem>>, vector<256x128xbf16>
    %cst = arith.constant dense<0.000000e+00> : vector<64x128xf32>
    %3 = tpu.matmul %1, %2, %cst {dimension_numbers = #tpu.dot_dimension_numbers<[1], [0], [0], [1], [0, 0, 1, 1], [], []>} : vector<64x256xbf16>, vector<256x128xbf16>, vector<64x128xf32> -> vector<64x128xf32>
    %c0_4 = arith.constant 0 : index
    %c0_5 = arith.constant 0 : index
    %4 = vector.load %arg3[%c0_4, %c0_5] : memref<1x128xf32, #tpu.memory_space<vmem>>, vector<1x128xf32>
    %5 = vector.broadcast %4 : vector<1x128xf32> to vector<64x128xf32>
    %6 = arith.addf %3, %5 : vector<64x128xf32>
    %cst_6 = arith.constant 0.000000e+00 : f32
    %7 = vector.broadcast %cst_6 : f32 to vector<64x128xf32>
    %8 = arith.maximumf %6, %7 : vector<64x128xf32>
    %9 = vector.extract_strided_slice %8 {offsets = [0, 0], sizes = [64, 1], strides = [1, 1]} : vector<64x128xf32> to vector<64x1xf32>
    %c0_7 = arith.constant 0 : index
    %c0_8 = arith.constant 0 : index
    %c0_9 = arith.constant 0 : index
    %10 = vector.load %arg4[%c0_7, %c0_8, %c0_9] : memref<16x64x128xf32, #tpu.memory_space<vmem>>, vector<1x64x128xf32>
    %11 = vector.shape_cast %10 : vector<1x64x128xf32> to vector<64x128xf32>
    %12 = vector.broadcast %9 : vector<64x1xf32> to vector<64x128xf32>
    %13 = arith.mulf %12, %11 : vector<64x128xf32>
    %14 = vector.extract_strided_slice %8 {offsets = [0, 1], sizes = [64, 1], strides = [1, 1]} : vector<64x128xf32> to vector<64x1xf32>
    %c1 = arith.constant 1 : index
    %c0_10 = arith.constant 0 : index
    %c0_11 = arith.constant 0 : index
    %15 = vector.load %arg4[%c1, %c0_10, %c0_11] : memref<16x64x128xf32, #tpu.memory_space<vmem>>, vector<1x64x128xf32>
    %16 = vector.shape_cast %15 : vector<1x64x128xf32> to vector<64x128xf32>
    %17 = vector.broadcast %14 : vector<64x1xf32> to vector<64x128xf32>
    %18 = arith.mulf %17, %16 : vector<64x128xf32>
    %19 = arith.addf %13, %18 : vector<64x128xf32>
    %20 = vector.extract_strided_slice %8 {offsets = [0, 2], sizes = [64, 1], strides = [1, 1]} : vector<64x128xf32> to vector<64x1xf32>
    %c2 = arith.constant 2 : index
    %c0_12 = arith.constant 0 : index
    %c0_13 = arith.constant 0 : index
    %21 = vector.load %arg4[%c2, %c0_12, %c0_13] : memref<16x64x128xf32, #tpu.memory_space<vmem>>, vector<1x64x128xf32>
    %22 = vector.shape_cast %21 : vector<1x64x128xf32> to vector<64x128xf32>
    %23 = vector.broadcast %20 : vector<64x1xf32> to vector<64x128xf32>
    %24 = arith.mulf %23, %22 : vector<64x128xf32>
    %25 = arith.addf %19, %24 : vector<64x128xf32>
    %26 = vector.extract_strided_slice %8 {offsets = [0, 3], sizes = [64, 1], strides = [1, 1]} : vector<64x128xf32> to vector<64x1xf32>
    %c3 = arith.constant 3 : index
    %c0_14 = arith.constant 0 : index
    %c0_15 = arith.constant 0 : index
    %27 = vector.load %arg4[%c3, %c0_14, %c0_15] : memref<16x64x128xf32, #tpu.memory_space<vmem>>, vector<1x64x128xf32>
    %28 = vector.shape_cast %27 : vector<1x64x128xf32> to vector<64x128xf32>
    %29 = vector.broadcast %26 : vector<64x1xf32> to vector<64x128xf32>
    %30 = arith.mulf %29, %28 : vector<64x128xf32>
    %31 = arith.addf %25, %30 : vector<64x128xf32>
    %32 = vector.extract_strided_slice %8 {offsets = [0, 4], sizes = [64, 1], strides = [1, 1]} : vector<64x128xf32> to vector<64x1xf32>
    %c4 = arith.constant 4 : index
    %c0_16 = arith.constant 0 : index
    %c0_17 = arith.constant 0 : index
    %33 = vector.load %arg4[%c4, %c0_16, %c0_17] : memref<16x64x128xf32, #tpu.memory_space<vmem>>, vector<1x64x128xf32>
    %34 = vector.shape_cast %33 : vector<1x64x128xf32> to vector<64x128xf32>
    %35 = vector.broadcast %32 : vector<64x1xf32> to vector<64x128xf32>
    %36 = arith.mulf %35, %34 : vector<64x128xf32>
    %37 = arith.addf %31, %36 : vector<64x128xf32>
    %38 = vector.extract_strided_slice %8 {offsets = [0, 5], sizes = [64, 1], strides = [1, 1]} : vector<64x128xf32> to vector<64x1xf32>
    %c5 = arith.constant 5 : index
    %c0_18 = arith.constant 0 : index
    %c0_19 = arith.constant 0 : index
    %39 = vector.load %arg4[%c5, %c0_18, %c0_19] : memref<16x64x128xf32, #tpu.memory_space<vmem>>, vector<1x64x128xf32>
    %40 = vector.shape_cast %39 : vector<1x64x128xf32> to vector<64x128xf32>
    %41 = vector.broadcast %38 : vector<64x1xf32> to vector<64x128xf32>
    %42 = arith.mulf %41, %40 : vector<64x128xf32>
    %43 = arith.addf %37, %42 : vector<64x128xf32>
    %44 = vector.extract_strided_slice %8 {offsets = [0, 6], sizes = [64, 1], strides = [1, 1]} : vector<64x128xf32> to vector<64x1xf32>
    %c6 = arith.constant 6 : index
    %c0_20 = arith.constant 0 : index
    %c0_21 = arith.constant 0 : index
    %45 = vector.load %arg4[%c6, %c0_20, %c0_21] : memref<16x64x128xf32, #tpu.memory_space<vmem>>, vector<1x64x128xf32>
    %46 = vector.shape_cast %45 : vector<1x64x128xf32> to vector<64x128xf32>
    %47 = vector.broadcast %44 : vector<64x1xf32> to vector<64x128xf32>
    %48 = arith.mulf %47, %46 : vector<64x128xf32>
    %49 = arith.addf %43, %48 : vector<64x128xf32>
    %50 = vector.extract_strided_slice %8 {offsets = [0, 7], sizes = [64, 1], strides = [1, 1]} : vector<64x128xf32> to vector<64x1xf32>
    %c7 = arith.constant 7 : index
    %c0_22 = arith.constant 0 : index
    %c0_23 = arith.constant 0 : index
    %51 = vector.load %arg4[%c7, %c0_22, %c0_23] : memref<16x64x128xf32, #tpu.memory_space<vmem>>, vector<1x64x128xf32>
    %52 = vector.shape_cast %51 : vector<1x64x128xf32> to vector<64x128xf32>
    %53 = vector.broadcast %50 : vector<64x1xf32> to vector<64x128xf32>
    %54 = arith.mulf %53, %52 : vector<64x128xf32>
    %55 = arith.addf %49, %54 : vector<64x128xf32>
    %56 = vector.extract_strided_slice %8 {offsets = [0, 8], sizes = [64, 1], strides = [1, 1]} : vector<64x128xf32> to vector<64x1xf32>
    %c8 = arith.constant 8 : index
    %c0_24 = arith.constant 0 : index
    %c0_25 = arith.constant 0 : index
    %57 = vector.load %arg4[%c8, %c0_24, %c0_25] : memref<16x64x128xf32, #tpu.memory_space<vmem>>, vector<1x64x128xf32>
    %58 = vector.shape_cast %57 : vector<1x64x128xf32> to vector<64x128xf32>
    %59 = vector.broadcast %56 : vector<64x1xf32> to vector<64x128xf32>
    %60 = arith.mulf %59, %58 : vector<64x128xf32>
    %61 = arith.addf %55, %60 : vector<64x128xf32>
    %62 = vector.extract_strided_slice %8 {offsets = [0, 9], sizes = [64, 1], strides = [1, 1]} : vector<64x128xf32> to vector<64x1xf32>
    %c9 = arith.constant 9 : index
    %c0_26 = arith.constant 0 : index
    %c0_27 = arith.constant 0 : index
    %63 = vector.load %arg4[%c9, %c0_26, %c0_27] : memref<16x64x128xf32, #tpu.memory_space<vmem>>, vector<1x64x128xf32>
    %64 = vector.shape_cast %63 : vector<1x64x128xf32> to vector<64x128xf32>
    %65 = vector.broadcast %62 : vector<64x1xf32> to vector<64x128xf32>
    %66 = arith.mulf %65, %64 : vector<64x128xf32>
    %67 = arith.addf %61, %66 : vector<64x128xf32>
    %68 = vector.extract_strided_slice %8 {offsets = [0, 10], sizes = [64, 1], strides = [1, 1]} : vector<64x128xf32> to vector<64x1xf32>
    %c10 = arith.constant 10 : index
    %c0_28 = arith.constant 0 : index
    %c0_29 = arith.constant 0 : index
    %69 = vector.load %arg4[%c10, %c0_28, %c0_29] : memref<16x64x128xf32, #tpu.memory_space<vmem>>, vector<1x64x128xf32>
    %70 = vector.shape_cast %69 : vector<1x64x128xf32> to vector<64x128xf32>
    %71 = vector.broadcast %68 : vector<64x1xf32> to vector<64x128xf32>
    %72 = arith.mulf %71, %70 : vector<64x128xf32>
    %73 = arith.addf %67, %72 : vector<64x128xf32>
    %74 = vector.extract_strided_slice %8 {offsets = [0, 11], sizes = [64, 1], strides = [1, 1]} : vector<64x128xf32> to vector<64x1xf32>
    %c11 = arith.constant 11 : index
    %c0_30 = arith.constant 0 : index
    %c0_31 = arith.constant 0 : index
    %75 = vector.load %arg4[%c11, %c0_30, %c0_31] : memref<16x64x128xf32, #tpu.memory_space<vmem>>, vector<1x64x128xf32>
    %76 = vector.shape_cast %75 : vector<1x64x128xf32> to vector<64x128xf32>
    %77 = vector.broadcast %74 : vector<64x1xf32> to vector<64x128xf32>
    %78 = arith.mulf %77, %76 : vector<64x128xf32>
    %79 = arith.addf %73, %78 : vector<64x128xf32>
    %80 = vector.extract_strided_slice %8 {offsets = [0, 12], sizes = [64, 1], strides = [1, 1]} : vector<64x128xf32> to vector<64x1xf32>
    %c12 = arith.constant 12 : index
    %c0_32 = arith.constant 0 : index
    %c0_33 = arith.constant 0 : index
    %81 = vector.load %arg4[%c12, %c0_32, %c0_33] : memref<16x64x128xf32, #tpu.memory_space<vmem>>, vector<1x64x128xf32>
    %82 = vector.shape_cast %81 : vector<1x64x128xf32> to vector<64x128xf32>
    %83 = vector.broadcast %80 : vector<64x1xf32> to vector<64x128xf32>
    %84 = arith.mulf %83, %82 : vector<64x128xf32>
    %85 = arith.addf %79, %84 : vector<64x128xf32>
    %86 = vector.extract_strided_slice %8 {offsets = [0, 13], sizes = [64, 1], strides = [1, 1]} : vector<64x128xf32> to vector<64x1xf32>
    %c13 = arith.constant 13 : index
    %c0_34 = arith.constant 0 : index
    %c0_35 = arith.constant 0 : index
    %87 = vector.load %arg4[%c13, %c0_34, %c0_35] : memref<16x64x128xf32, #tpu.memory_space<vmem>>, vector<1x64x128xf32>
    %88 = vector.shape_cast %87 : vector<1x64x128xf32> to vector<64x128xf32>
    %89 = vector.broadcast %86 : vector<64x1xf32> to vector<64x128xf32>
    %90 = arith.mulf %89, %88 : vector<64x128xf32>
    %91 = arith.addf %85, %90 : vector<64x128xf32>
    %92 = vector.extract_strided_slice %8 {offsets = [0, 14], sizes = [64, 1], strides = [1, 1]} : vector<64x128xf32> to vector<64x1xf32>
    %c14 = arith.constant 14 : index
    %c0_36 = arith.constant 0 : index
    %c0_37 = arith.constant 0 : index
    %93 = vector.load %arg4[%c14, %c0_36, %c0_37] : memref<16x64x128xf32, #tpu.memory_space<vmem>>, vector<1x64x128xf32>
    %94 = vector.shape_cast %93 : vector<1x64x128xf32> to vector<64x128xf32>
    %95 = vector.broadcast %92 : vector<64x1xf32> to vector<64x128xf32>
    %96 = arith.mulf %95, %94 : vector<64x128xf32>
    %97 = arith.addf %91, %96 : vector<64x128xf32>
    %98 = vector.extract_strided_slice %8 {offsets = [0, 15], sizes = [64, 1], strides = [1, 1]} : vector<64x128xf32> to vector<64x1xf32>
    %c15 = arith.constant 15 : index
    %c0_38 = arith.constant 0 : index
    %c0_39 = arith.constant 0 : index
    %99 = vector.load %arg4[%c15, %c0_38, %c0_39] : memref<16x64x128xf32, #tpu.memory_space<vmem>>, vector<1x64x128xf32>
    %100 = vector.shape_cast %99 : vector<1x64x128xf32> to vector<64x128xf32>
    %101 = vector.broadcast %98 : vector<64x1xf32> to vector<64x128xf32>
    %102 = arith.mulf %101, %100 : vector<64x128xf32>
    %103 = arith.addf %97, %102 : vector<64x128xf32>
    %cst_40 = arith.constant dense<0.000000e+00> : vector<128xf32>
    %104 = vector.multi_reduction <add>, %103, %cst_40 [0] : vector<64x128xf32> to vector<128xf32>
    %105 = vector.shape_cast %104 : vector<128xf32> to vector<1x128xf32>
    %c0_41 = arith.constant 0 : index
    %c0_42 = arith.constant 0 : index
    %106 = vector.load %arg5[%c0_41, %c0_42] : memref<1x128xf32, #tpu.memory_space<vmem>>, vector<1x128xf32>
    %107 = arith.addf %105, %106 : vector<1x128xf32>
    %108 = vector.shape_cast %107 : vector<1x128xf32> to vector<1x128xf32>
    %109 = vector.broadcast %108 : vector<1x128xf32> to vector<8x128xf32>
    %cst_43 = arith.constant 0.000000e+00 : f32
    %110 = vector.broadcast %cst_43 : f32 to vector<8x128xf32>
    %111 = arith.maximumf %109, %110 : vector<8x128xf32>
    %112 = arith.truncf %111 : vector<8x128xf32> to vector<8x128xbf16>
    %c0_44 = arith.constant 0 : index
    %c0_45 = arith.constant 0 : index
    %113 = vector.load %arg6[%c0_44, %c0_45] : memref<128x128xbf16, #tpu.memory_space<vmem>>, vector<128x128xbf16>
    %cst_46 = arith.constant dense<0.000000e+00> : vector<8x128xf32>
    %114 = tpu.matmul %112, %113, %cst_46 {dimension_numbers = #tpu.dot_dimension_numbers<[1], [0], [0], [1], [0, 0, 1, 1], [], []>} : vector<8x128xbf16>, vector<128x128xbf16>, vector<8x128xf32> -> vector<8x128xf32>
    %c0_47 = arith.constant 0 : index
    %c0_48 = arith.constant 0 : index
    %115 = vector.load %arg7[%c0_47, %c0_48] : memref<1x128xf32, #tpu.memory_space<vmem>>, vector<1x128xf32>
    %116 = vector.broadcast %115 : vector<1x128xf32> to vector<8x128xf32>
    %117 = arith.addf %114, %116 : vector<8x128xf32>
    %cst_49 = arith.constant 0.000000e+00 : f32
    %118 = vector.broadcast %cst_49 : f32 to vector<8x128xf32>
    %119 = arith.maximumf %117, %118 : vector<8x128xf32>
    %120 = arith.truncf %119 : vector<8x128xf32> to vector<8x128xbf16>
    %c0_50 = arith.constant 0 : index
    %c0_51 = arith.constant 0 : index
    %121 = vector.load %arg8[%c0_50, %c0_51] : memref<128x128xbf16, #tpu.memory_space<vmem>>, vector<128x128xbf16>
    %cst_52 = arith.constant dense<0.000000e+00> : vector<8x128xf32>
    %122 = tpu.matmul %120, %121, %cst_52 {dimension_numbers = #tpu.dot_dimension_numbers<[1], [0], [0], [1], [0, 0, 1, 1], [], []>} : vector<8x128xbf16>, vector<128x128xbf16>, vector<8x128xf32> -> vector<8x128xf32>
    %c0_53 = arith.constant 0 : index
    %c0_54 = arith.constant 0 : index
    %123 = vector.load %arg9[%c0_53, %c0_54] : memref<1x128xf32, #tpu.memory_space<vmem>>, vector<1x128xf32>
    %124 = vector.broadcast %123 : vector<1x128xf32> to vector<8x128xf32>
    %125 = arith.addf %122, %124 : vector<8x128xf32>
    %c0_55 = arith.constant 0 : index
    %c0_56 = arith.constant 0 : index
    %c0_57 = arith.constant 0 : index
    %126 = vector.load %arg10[%c0_55, %c0_56, %c0_57] : memref<1x8x128xf32, #tpu.memory_space<vmem>>, vector<1x8x128xf32>
    %127 = vector.shape_cast %126 : vector<1x8x128xf32> to vector<8x128xf32>
    %128 = vector.shape_cast %125 : vector<8x128xf32> to vector<1x8x128xf32>
    tpu.vector_store %arg10[%c0_55, %c0_56, %c0_57], %128 {strides = array<i32>} : memref<1x8x128xf32, #tpu.memory_space<vmem>>, vector<1x8x128xf32>,
    return
  }
  func.func @transform_0(%arg0: i32) -> (i32, i32, i32) {
    %c0_i32 = arith.constant 0 : i32
    %c0_i32_0 = arith.constant 0 : i32
    %c0_i32_1 = arith.constant 0 : i32
    return %arg0, %c0_i32, %c0_i32_0 : i32, i32, i32
  }
  func.func @transform_1(%arg0: i32) -> (i32, i32) {
    %c0_i32 = arith.constant 0 : i32
    %c0_i32_0 = arith.constant 0 : i32
    %c0_i32_1 = arith.constant 0 : i32
    return %c0_i32, %c0_i32_0 : i32, i32
  }
  func.func @transform_2(%arg0: i32) -> (i32, i32) {
    %c0_i32 = arith.constant 0 : i32
    %c0_i32_0 = arith.constant 0 : i32
    %c0_i32_1 = arith.constant 0 : i32
    return %c0_i32, %c0_i32_0 : i32, i32
  }
  func.func @transform_3(%arg0: i32) -> (i32, i32, i32) {
    %c0_i32 = arith.constant 0 : i32
    %c0_i32_0 = arith.constant 0 : i32
    %c0_i32_1 = arith.constant 0 : i32
    %c0_i32_2 = arith.constant 0 : i32
    return %c0_i32, %c0_i32_0, %c0_i32_1 : i32, i32, i32
  }
  func.func @transform_4(%arg0: i32) -> (i32, i32) {
    %c0_i32 = arith.constant 0 : i32
    %c0_i32_0 = arith.constant 0 : i32
    %c0_i32_1 = arith.constant 0 : i32
    return %c0_i32, %c0_i32_0 : i32, i32
  }
  func.func @transform_5(%arg0: i32) -> (i32, i32) {
    %c0_i32 = arith.constant 0 : i32
    %c0_i32_0 = arith.constant 0 : i32
    %c0_i32_1 = arith.constant 0 : i32
    return %c0_i32, %c0_i32_0 : i32, i32
  }
  func.func @transform_6(%arg0: i32) -> (i32, i32) {
    %c0_i32 = arith.constant 0 : i32
    %c0_i32_0 = arith.constant 0 : i32
    %c0_i32_1 = arith.constant 0 : i32
    return %c0_i32, %c0_i32_0 : i32, i32
  }
  func.func @transform_7(%arg0: i32) -> (i32, i32) {
    %c0_i32 = arith.constant 0 : i32
    %c0_i32_0 = arith.constant 0 : i32
    %c0_i32_1 = arith.constant 0 : i32
    return %c0_i32, %c0_i32_0 : i32, i32
  }
  func.func @transform_8(%arg0: i32) -> (i32, i32) {
    %c0_i32 = arith.constant 0 : i32
    %c0_i32_0 = arith.constant 0 : i32
    %c0_i32_1 = arith.constant 0 : i32
    return %c0_i32, %c0_i32_0 : i32, i32
  }
  func.func @transform_9(%arg0: i32) -> (i32, i32, i32) {
    %c0_i32 = arith.constant 0 : i32
    %c0_i32_0 = arith.constant 0 : i32
    %c0_i32_1 = arith.constant 0 : i32
    return %arg0, %c0_i32, %c0_i32_0 : i32, i32, i32
  }
}

</mosaic_0001>

<bundles_post_ra>
// kernel: forward.1
= control target key start
LH: loop header
LB: loop body
LE: loop exit
PB: predicated region body
PF: predicated region fallthrough
CT: control target
= control target key end

     0   :  { %s2339_s30 = smov 0   ;;  %s3298_s0 = inlined_call_operand.vmem [shape: bf16[2,64,256], index: 0, kind: input, shape index: {}]   ;;  %s3299_s1 = inlined_call_operand.vmem [shape: bf16[256,128], index: 1, kind: input, shape index: {}]   ;;  %s3300_s2 = inlined_call_operand.vmem [shape: f32[1,128], index: 2, kind: input, shape index: {}]   ;;  %s3301_s3 = inlined_call_operand.vmem [shape: f32[16,64,128], index: 3, kind: input, shape index: {}]   ;;  %s3302_s4 = inlined_call_operand.vmem [shape: f32[1,128], index: 4, kind: input, shape index: {}]   ;;  %s3303_s5 = inlined_call_operand.vmem [shape: bf16[128,128], index: 5, kind: input, shape index: {}]   ;;  %s3304_s6 = inlined_call_operand.vmem [shape: f32[1,128], index: 6, kind: input, shape index: {}]   ;;  %s3305_s7 = inlined_call_operand.vmem [shape: bf16[128,128], index: 7, kind: input, shape index: {}]   ;;  %s3306_s8 = inlined_call_operand.vmem [shape: f32[1,128], index: 8, kind: input, shape index: {}]   ;;  %s3307_s9 = inlined_call_operand.vmem [shape: f32[2,8,128], index: 9, kind: output, shape index: {}]  }
   0x1 LB: > { %s1798_s10 = sadd.s32 4294967295, %s2269_s30   ;;  %p1802_p0 = scmp.ge.s32.totalorder %s2269_s30, 1  ;;  %s2269_s30 = sphi %s2339_s30, %s19_s30  }
   0x2   : > { %p287_p1 = scmp.lt.s32.totalorder %s2269_s30, 3 }
   0x4   : > { %p288_p2 = pnand %p1802_p0, %p287_p1 }
   0x5   : > { %v2219_v0 = vld [vmem:[%s3299_s1 + $0x40] sm:$0xff] (!%p288_p2)   ;;  %v2221_v2 = vld [vmem:[%s3299_s1 + $0x48] sm:$0xff] (!%p288_p2)   ;;  %p322_p3 = scmp.lt.s32.totalorder (!%p288_p2), %s1798_s10, 1  ;;  %v2223_v4 = vld [vmem:[%s3299_s1 + $0x50] sm:$0xff] (!%p288_p2)   ;;  %v2271_v24 = vmov (!%p288_p2), 1   ;;  %v2272_v25 = vmov (!%p288_p2), 0  }
   0x6   : > { %291 = sbr.rel (%p288_p2) target bundleno = 1255 (0x4e7), region = 56  ;;  %v2220_v1 = vld [vmem:[%s3299_s1] sm:$0xff] (!%p288_p2)   ;;  %1972 = vmatprep.subr.bf16.mxu0 (!%p288_p2), %v2219_v0  ;;  %v2222_v3 = vld [vmem:[%s3299_s1 + $0x8] sm:$0xff] (!%p288_p2)   ;;  %v2224_v5 = vld [vmem:[%s3299_s1 + $0x10] sm:$0xff] (!%p288_p2)   ;;  %2097 = vset.pattern.permute.xlu1 (!%p288_p2), %v2271_v24  ;;  %v2273_v40 = vmov (!%p288_p2), 3   ;;  %v2274_v41 = vmov (!%p288_p2), 2  }
   0x7   : > { %1973 = vmatpush3.bf16.msra.mxu0 (!%p288_p2), %v2220_v1  ;;  %v2225_v6 = vld [vmem:[%s3299_s1 + $0x58] sm:$0xff] (!%p288_p2)   ;;  %v2227_v8 = vld [vmem:[%s3299_s1 + $0x60] sm:$0xff] (!%p288_p2)   ;;  %v2229_v10 = vld [vmem:[%s3299_s1 + $0x68] sm:$0xff] (!%p288_p2)   ;;  %2096 = vset.pattern.permute.xlu0 (!%p288_p2), %v2272_v25  ;;  %v2275_v45 = vmov (!%p288_p2), 4   ;;  %v2276_v46 = vmov (!%p288_p2), 5   ;;  %v2277_v53 = vmov (!%p288_p2), 6  }
   0x8   : > { %1974 = vmatprep.subr.bf16.mxu0 (!%p288_p2), %v2221_v2  ;;  %v2226_v7 = vld [vmem:[%s3299_s1 + $0x18] sm:$0xff] (!%p288_p2)   ;;  %v2228_v9 = vld [vmem:[%s3299_s1 + $0x20] sm:$0xff] (!%p288_p2)   ;;  %v2230_v12 = vld [vmem:[%s3299_s1 + $0x28] sm:$0xff] (!%p288_p2)   ;;  %v2278_v54 = vmov (!%p288_p2), 9   ;;  %v2279_v60 = vmov (!%p288_p2), 7   ;;  %v2280_v61 = vmov (!%p288_p2), 12  }
   0x9   : > { %v2231_v13 = vld [vmem:[%s3299_s1 + $0x70] sm:$0xff] (!%p288_p2)   ;;  %v2233_v15 = vld [vmem:[%s3299_s1 + $0x78] sm:$0xff] (!%p288_p2)   ;;  %v2416_v27 = vld [vmem:[%s3300_s2] ss:$0 sm:$0xff] (!%p288_p2)  ;;  %v2281_v0 = vmov (!%p288_p2), 8   ;;  %v2282_v1 = vmov (!%p288_p2), 10  }
   0xa   : > { %v2232_v14 = vld [vmem:[%s3299_s1 + $0x30] sm:$0xff] (!%p288_p2)   ;;  %v2234_v16 = vld [vmem:[%s3299_s1 + $0x38] sm:$0xff] (!%p288_p2)   ;;  %vm2288_vm0 = vmmov (!%p288_p2), 0  }
   0xb   : > { %1975 = vmatpush3.bf16.msra.mxu0 (!%p288_p2), %v2222_v3  ;;  %v2283_v3 = vmov (!%p288_p2), 11  }
   0xc   : > { %1976 = vmatprep.subr.bf16.mxu0 (!%p288_p2), %v2223_v4 }
   0xd   : > { %s3309_s10 = smov (!%p322_p3, %s1798_s10), 1 }
   0xe   : > { %s1971_s27 = sshll.u32 %s3309_s10, 6  ;;  %s1805_s18 = sshll.u32 %s3309_s10, 3 }
   0xf   : > { %1977 = vmatpush3.bf16.msra.mxu0 %v2224_v5  ;;  %s2380_s13 = scalar_lea.vmem %s3298_s0, %s1971_s27  ;;  %s330_s23 = scalar_lea.vmem %s3307_s9, %s1805_s18 }
  0x10   : > { %1978 = vmatprep.subr.bf16.mxu0 %v2225_v6  ;;  %v2237_v11 = vld [vmem:[%s2380_s13 + $0x4] ss:$8 sps:$4 sm:$0xff]   ;;  %v2235_v17 = vld [vmem:[%s2380_s13] ss:$8 sps:$4 sm:$0xff]   ;;  %v2238_v18 = vld [vmem:[%s2380_s13 + $0x14] ss:$8 sps:$4 sm:$0xff]  }
  0x11   : > { %547 = vmatprep.mubr.bf16.mxu0 %v2237_v11  ;;  %v2240_v19 = vld [vmem:[%s2380_s13 + $0x10] ss:$8 sps:$4 sm:$0xff]   ;;  %v2241_v20 = vld [vmem:[%s2380_s13 + $0x24] ss:$8 sps:$4 sm:$0xff]   ;;  %v2243_v21 = vld [vmem:[%s2380_s13 + $0x20] ss:$8 sps:$4 sm:$0xff]  }
  0x12   : > { %v2244_v22 = vld [vmem:[%s2380_s13 + $0x34] ss:$8 sps:$4 sm:$0xff]   ;;  %v2246_v23 = vld [vmem:[%s2380_s13 + $0x30] ss:$8 sps:$4 sm:$0xff]  }
  0x13   : > { %1979 = vmatpush3.bf16.msra.mxu0 %v2226_v7  ;;  %v2284_v7 = vmov 13  }
  0x14   : > { %1980 = vmatprep.subr.bf16.mxu0 %v2227_v8  ;;  %v2285_v8 = vmov 14  }
  0x17   : > { %1981 = vmatpush3.bf16.msra.mxu0 %v2228_v9 }
  0x18   : > { %1982 = vmatprep.subr.bf16.mxu0 %v2229_v10 }
  0x1b   : > { %1983 = vmatpush3.bf16.msra.mxu0 %v2230_v12  ;;  %v2286_v12 = vmov 15  }
  0x1c   : > { %1984 = vmatprep.subr.bf16.mxu0 %v2231_v13 }
  0x1f   : > { %1985 = vmatpush3.bf16.msra.mxu0 %v2232_v14 }
  0x20   : > { %1986 = vmatprep.subr.bf16.mxu0 %v2233_v15  ;;  %v1831_v15 = vld [vmem:[%s3301_s3 + $0x40] sm:$0xff] }
  0x23   : > { %1987 = vmatpush3.bf16.msra.mxu0 %v2234_v16  ;;  %v588_v16 = vld [vmem:[%s3301_s3] sm:$0xff] }
  0x26   : > { %548 = vmatmul.mubr.bf16.vlgmr.msra.gmra.mrb[0].mxu0 %v2235_v17 }
  0x27   : > { %555 = vmatprep.mubr.bf16.mxu0 %v2238_v18 }
  0x2e   : > { %556 = vmatmul.mubr.bf16.gmra.mrb[4].mxu0 %v2240_v19 }
  0x2f   : > { %563 = vmatprep.mubr.bf16.mxu0 %v2241_v20 }
  0x36   : > { %564 = vmatmul.mubr.bf16.gmra.mrb[8].mxu0 %v2243_v21  ;;  %v1839_v21 = vld [vmem:[%s3301_s3 + $0x80] sm:$0xff] }
  0x37   : > { %571 = vmatprep.mubr.bf16.mxu0 %v2244_v22  ;;  %v1847_v22 = vld [vmem:[%s3301_s3 + $0xc0] sm:$0xff] }
  0x3e   : > { %572 = vmatmul.mubr.bf16.gmra.mrb[12].mxu0 %v2246_v23 }
  0xf9   : > { %v1988_v26 = vpop.f32.mrb[0].mxu0 }
  0xfa   : > { %v1989_v28 = vpop.f32.mrb[1].mxu0 }
  0xfb   : > { %v1990_v29 = vadd.f32 %v1989_v28, %v1988_v26  ;;  %v1991_v30 = vpop.f32.mrb[2].mxu0 }
  0xfc   : > { %v1992_v31 = vpop.f32.mrb[3].mxu0 }
  0xfd   : > { %v550_v32 = vadd.f32 %v1990_v29, %v2416_v27  ;;  %v1993_v33 = vadd.f32 %v1992_v31, %v1991_v30  ;;  %v1855_v31 = vld [vmem:[%s3301_s3 + $0x100] sm:$0xff] }
  0xff   : > { %v2419_v34 = vmax.f32 %v550_v32, 0.0  ;;  %v553_v59 = vadd.f32 %v1993_v33, %v2416_v27 }
 0x101   : > { %654 = vperm.xlu1 %2097, %v2419_v34   ;;  %598 = vperm.xlu0 %2096, %v2419_v34   ;;  %v1994_v35 = vpop.f32.mrb[4].mxu0  ;;  %v2454_v63 = vmax.f32 %v553_v59, 0.0 }
 0x102   : > { %v1995_v36 = vpop.f32.mrb[5].mxu0 }
 0x103   : > { %v2423_v37 = vadd.f32 %v1995_v36, %v1994_v35  ;;  %v1997_v38 = vpop.f32.mrb[6].mxu0  ;;  %v1863_v35 = vld [vmem:[%s3301_s3 + $0x140] sm:$0xff] }
 0x104   : > { %v1998_v39 = vpop.f32.mrb[7].mxu0 }
 0x105   : > { %2099 = vset.pattern.permute.xlu1 %v2273_v40  ;;  %2098 = vset.pattern.permute.xlu0 %v2274_v41  ;;  %v1999_v42 = vadd.f32 %v1998_v39, %v1997_v38  ;;  %v558_v9 = vadd.f32 %v2423_v37, %v2416_v27 }
 0x106   : > { %768 = vperm.xlu1 %2099, %v2419_v34   ;;  %711 = vperm.xlu0 %2098, %v2419_v34  }
 0x107   : > { %v2430_v43 = vadd.f32 %v1999_v42, %v2416_v27  ;;  %v2489_v10 = vmax.f32 %v558_v9, 0.0  ;;  %v1903_v9 = vld [vmem:[%s3301_s3 + $0x280] sm:$0xff] }
 0x109   : > { %v2000_v44 = vpop.f32.mrb[8].mxu0  ;;  %v2508_v11 = vmax.f32 %v2430_v43, 0.0 }
 0x10a   : > { %2100 = vset.pattern.permute.xlu1 %v2275_v45  ;;  %2101 = vset.pattern.permute.xlu0 %v2276_v46  ;;  %v2001_v47 = vpop.f32.mrb[9].mxu0 }
 0x10b   : > { %825 = vperm.xlu1 %2100, %v2419_v34   ;;  %882 = vperm.xlu0 %2101, %v2419_v34   ;;  %v2002_v48 = vadd.f32 %v2001_v47, %v2000_v44  ;;  %v2003_v49 = vpop.f32.mrb[10].mxu0 }
 0x10c   : > { %v2004_v50 = vpop.f32.mrb[11].mxu0 }
 0x10d   : > { %v2437_v51 = vadd.f32 %v2002_v48, %v2416_v27  ;;  %v2005_v52 = vadd.f32 %v2004_v50, %v2003_v49  ;;  %v1871_v48 = vld [vmem:[%s3301_s3 + $0x180] sm:$0xff] }
 0x10e   : > { %v1879_v49 = vld [vmem:[%s3301_s3 + $0x1c0] sm:$0xff] }
 0x10f   : > { %2102 = vset.pattern.permute.xlu1 %v2277_v53  ;;  %2105 = vset.pattern.permute.xlu0 %v2278_v54  ;;  %v2442_v55 = vadd.f32 %v2005_v52, %v2416_v27  ;;  %v2535_v13 = vmax.f32 %v2437_v51, 0.0 }
 0x110   : > { %939 = vperm.xlu1 %2102, %v2419_v34   ;;  %1110 = vperm.xlu0 %2105, %v2419_v34  }
 0x111   : > { %v2006_v56 = vpop.f32.mrb[12].mxu0  ;;  %v2554_v14 = vmax.f32 %v2442_v55, 0.0 }
 0x112   : > { %v2007_v57 = vpop.f32.mrb[13].mxu0 }
 0x113   : > { %v2008_v58 = vadd.f32 %v2007_v57, %v2006_v56  ;;  %v2009_v2 = vpop.f32.mrb[14].mxu0  ;;  %v1887_v56 = vld [vmem:[%s3301_s3 + $0x200] sm:$0xff] }
 0x114   : > { %2103 = vset.pattern.permute.xlu1 %v2279_v60  ;;  %2108 = vset.pattern.permute.xlu0 %v2280_v61  ;;  %v2010_v4 = vpop.f32.mrb[15].mxu0 }
 0x115   : > { %996 = vperm.xlu1 %2103, %v2419_v34   ;;  %1281 = vperm.xlu0 %2108, %v2419_v34   ;;  %v2452_v62 = vadd.f32 %v2008_v58, %v2416_v27  ;;  %v2011_v5 = vadd.f32 %v2010_v4, %v2009_v2  ;;  %v1895_v58 = vld [vmem:[%s3301_s3 + $0x240] sm:$0xff] }
 0x117   : > { %v2469_v6 = vadd.f32 %v2011_v5, %v2416_v27  ;;  %v2587_v42 = vmax.f32 %v2452_v62, 0.0 }
 0x119   : > { %2104 = vset.pattern.permute.xlu1 %v2281_v0  ;;  %2111 = vset.pattern.permute.xlu0 %v2272_v25 }
 0x11a   : > { %1053 = vperm.xlu1 %2104, %v2419_v34   ;;  %603 = vperm.xlu0 %2111, %v2454_v63  }
 0x11e   : > { %2106 = vset.pattern.permute.xlu1 %v2282_v1  ;;  %2114 = vset.pattern.permute.xlu0 %v2273_v40 }
 0x11f   : > { %1167 = vperm.xlu1 %2106, %v2419_v34   ;;  %772 = vperm.xlu0 %2114, %v2454_v63  }
 0x123   : > { %2107 = vset.pattern.permute.xlu1 %v2283_v3  ;;  %2115 = vset.pattern.permute.xlu0 %v2275_v45 }
 0x124   : > { %1224 = vperm.xlu1 %2107, %v2419_v34   ;;  %829 = vperm.xlu0 %2115, %v2454_v63  }
 0x128   : > { %2109 = vset.pattern.permute.xlu1 %v2284_v7  ;;  %2117 = vset.pattern.permute.xlu0 %v2277_v53 }
 0x129   : > { %1338 = vperm.xlu1 %2109, %v2419_v34   ;;  %943 = vperm.xlu0 %2117, %v2454_v63  }
 0x12d   : > { %2110 = vset.pattern.permute.xlu1 %v2285_v8  ;;  %2118 = vset.pattern.permute.xlu0 %v2279_v60 }
 0x12e   : > { %1395 = vperm.xlu1 %2110, %v2419_v34   ;;  %1000 = vperm.xlu0 %2118, %v2454_v63  }
 0x132   : > { %2112 = vset.pattern.permute.xlu1 %v2271_v24  ;;  %2121 = vset.pattern.permute.xlu0 %v2282_v1 }
 0x133   : > { %658 = vperm.xlu1 %2112, %v2454_v63   ;;  %1171 = vperm.xlu0 %2121, %v2454_v63  }
 0x137   : > { %2113 = vset.pattern.permute.xlu1 %v2274_v41  ;;  %2124 = vset.pattern.permute.xlu0 %v2284_v7 }
 0x138   : > { %715 = vperm.xlu1 %2113, %v2454_v63   ;;  %1342 = vperm.xlu0 %2124, %v2454_v63  }
 0x13c   : > { %2116 = vset.pattern.permute.xlu1 %v2276_v46  ;;  %2127 = vset.pattern.permute.xlu0 %v2272_v25 }
 0x13d   : > { %886 = vperm.xlu1 %2116, %v2454_v63   ;;  %608 = vperm.xlu0 %2127, %v2489_v10  }
 0x141   : > { %2119 = vset.pattern.permute.xlu1 %v2281_v0  ;;  %2134 = vset.pattern.permute.xlu0 %v2279_v60 }
 0x142   : > { %1057 = vperm.xlu1 %2119, %v2454_v63   ;;  %1004 = vperm.xlu0 %2134, %v2489_v10  }
 0x146   : > { %2120 = vset.pattern.permute.xlu1 %v2278_v54  ;;  %2137 = vset.pattern.permute.xlu0 %v2282_v1 }
 0x147   : > { %1114 = vperm.xlu1 %2120, %v2454_v63   ;;  %1175 = vperm.xlu0 %2137, %v2489_v10  }
 0x14b   : > { %2122 = vset.pattern.permute.xlu1 %v2283_v3  ;;  %2140 = vset.pattern.permute.xlu0 %v2284_v7 }
 0x14c   : > { %1228 = vperm.xlu1 %2122, %v2454_v63   ;;  %1346 = vperm.xlu0 %2140, %v2489_v10  }
 0x150   : > { %2123 = vset.pattern.permute.xlu1 %v2280_v61  ;;  %2143 = vset.pattern.permute.xlu0 %v2271_v24 }
 0x151   : > { %1285 = vperm.xlu1 %2123, %v2454_v63   ;;  %666 = vperm.xlu0 %2143, %v2508_v11  }
 0x155   : > { %2125 = vset.pattern.permute.xlu1 %v2285_v8  ;;  %2144 = vset.pattern.permute.xlu0 %v2274_v41 }
 0x156   : > { %1399 = vperm.xlu1 %2125, %v2454_v63   ;;  %723 = vperm.xlu0 %2144, %v2508_v11  }
 0x15a   : > { %2126 = vset.pattern.permute.xlu1 %v2286_v12  ;;  %2146 = vset.pattern.permute.xlu0 %v2275_v45 }
 0x15b   : > { %1456 = vperm.xlu1 %2126, %v2454_v63   ;;  %837 = vperm.xlu0 %2146, %v2508_v11  }
 0x15f   : > { %2128 = vset.pattern.permute.xlu1 %v2271_v24  ;;  %2147 = vset.pattern.permute.xlu0 %v2276_v46 }
 0x160   : > { %662 = vperm.xlu1 %2128, %v2489_v10   ;;  %894 = vperm.xlu0 %2147, %v2508_v11  }
 0x164   : > { %2129 = vset.pattern.permute.xlu1 %v2274_v41  ;;  %2150 = vset.pattern.permute.xlu0 %v2281_v0 }
 0x165   : > { %719 = vperm.xlu1 %2129, %v2489_v10   ;;  %1065 = vperm.xlu0 %2150, %v2508_v11  }
 0x169   : > { %2130 = vset.pattern.permute.xlu1 %v2273_v40  ;;  %2153 = vset.pattern.permute.xlu0 %v2283_v3 }
 0x16a   : > { %776 = vperm.xlu1 %2130, %v2489_v10   ;;  %1236 = vperm.xlu0 %2153, %v2508_v11  }
 0x16e   : > { %2131 = vset.pattern.permute.xlu1 %v2275_v45  ;;  %2158 = vset.pattern.permute.xlu0 %v2274_v41 }
 0x16f   : > { %833 = vperm.xlu1 %2131, %v2489_v10   ;;  %727 = vperm.xlu0 %2158, %v2535_v13  }
 0x173   : > { %2132 = vset.pattern.permute.xlu1 %v2276_v46  ;;  %2162 = vset.pattern.permute.xlu0 %v2277_v53 }
 0x174   : > { %890 = vperm.xlu1 %2132, %v2489_v10   ;;  %955 = vperm.xlu0 %2162, %v2535_v13  }
 0x178   : > { %2133 = vset.pattern.permute.xlu1 %v2277_v53  ;;  %2165 = vset.pattern.permute.xlu0 %v2278_v54 }
 0x179   : > { %947 = vperm.xlu1 %2133, %v2489_v10   ;;  %1126 = vperm.xlu0 %2165, %v2535_v13  }
 0x17d   : > { %2135 = vset.pattern.permute.xlu1 %v2281_v0  ;;  %2168 = vset.pattern.permute.xlu0 %v2280_v61 }
 0x17e   : > { %1061 = vperm.xlu1 %2135, %v2489_v10   ;;  %1297 = vperm.xlu0 %2168, %v2535_v13  }
 0x180   : > { %v655_v17 = vpop.permute.xlu1 %654  ;;  %v599_v18 = vpop.permute.xlu0 %598 }
 0x181   : > { %v685_v19 = vmul.f32 %v1831_v15, %v655_v17  ;;  %v636_v20 = vmul.f32 %v599_v18, %v588_v16 }
 0x182   : > { %2136 = vset.pattern.permute.xlu1 %v2278_v54  ;;  %2173 = vset.pattern.permute.xlu0 %v2275_v45 }
 0x183   : > { %1118 = vperm.xlu1 %2136, %v2489_v10   ;;  %845 = vperm.xlu0 %2173, %v2554_v14   ;;  %v693_v27 = vadd.f32 %v685_v19, %v636_v20  ;;  %v1911_v19 = vld [vmem:[%s3301_s3 + $0x2c0] sm:$0xff] }
 0x184   : > { %v1919_v20 = vld [vmem:[%s3301_s3 + $0x300] sm:$0xff] }
 0x185   : > { %v769_v23 = vpop.permute.xlu1 %768  ;;  %v712_v26 = vpop.permute.xlu0 %711 }
 0x186   : > { %v742_v28 = vmul.f32 %v1839_v21, %v712_v26  ;;  %v799_v29 = vmul.f32 %v1847_v22, %v769_v23 }
 0x187   : > { %2138 = vset.pattern.permute.xlu1 %v2283_v3  ;;  %2176 = vset.pattern.permute.xlu0 %v2279_v60 }
 0x188   : > { %v750_v30 = vadd.f32 %v742_v28, %v693_v27  ;;  %1232 = vperm.xlu1 %2138, %v2489_v10   ;;  %1016 = vperm.xlu0 %2176, %v2554_v14  }
 0x18a   : > { %v807_v32 = vadd.f32 %v799_v29, %v750_v30  ;;  %v826_v33 = vpop.permute.xlu1 %825  ;;  %v883_v36 = vpop.permute.xlu0 %882  ;;  %v2631_v29 = vmax.f32 %v2469_v6, 0.0  ;;  %v1832_v6 = vld [vmem:[%s3301_s3 + $0x48] sm:$0xff] }
 0x18b   : > { %v856_v37 = vmul.f32 %v1855_v31, %v826_v33  ;;  %v913_v39 = vmul.f32 %v1863_v35, %v883_v36 }
 0x18c   : > { %2139 = vset.pattern.permute.xlu1 %v2280_v61  ;;  %2179 = vset.pattern.permute.xlu0 %v2282_v1 }
 0x18d   : > { %v864_v38 = vadd.f32 %v856_v37, %v807_v32  ;;  %1289 = vperm.xlu1 %2139, %v2489_v10   ;;  %1187 = vperm.xlu0 %2179, %v2554_v14  }
 0x18f   : > { %v921_v43 = vadd.f32 %v913_v39, %v864_v38  ;;  %v940_v44 = vpop.permute.xlu1 %939  ;;  %v1111_v47 = vpop.permute.xlu0 %1110  ;;  %v589_v38 = vld [vmem:[%s3301_s3 + $0x8] sm:$0xff] }
 0x190   : > { %v970_v50 = vmul.f32 %v1871_v48, %v940_v44  ;;  %v1141_v4 = vmul.f32 %v1895_v58, %v1111_v47  ;;  %v1848_v47 = vld [vmem:[%s3301_s3 + $0xc8] sm:$0xff] }
 0x191   : > { %2141 = vset.pattern.permute.xlu1 %v2285_v8  ;;  %2182 = vset.pattern.permute.xlu0 %v2271_v24 }
 0x192   : > { %1403 = vperm.xlu1 %2141, %v2489_v10   ;;  %678 = vperm.xlu0 %2182, %v2587_v42   ;;  %v978_v57 = vadd.f32 %v970_v50, %v921_v43  ;;  %v1840_v43 = vld [vmem:[%s3301_s3 + $0x88] sm:$0xff] }
 0x194   : > { %v997_v51 = vpop.permute.xlu1 %996  ;;  %v1282_v52 = vpop.permute.xlu0 %1281 }
 0x195   : > { %v1027_v55 = vmul.f32 %v1879_v49, %v997_v51  ;;  %v1312_v27 = vmul.f32 %v1919_v20, %v1282_v52  ;;  %v1856_v52 = vld [vmem:[%s3301_s3 + $0x108] sm:$0xff] }
 0x196   : > { %2142 = vset.pattern.permute.xlu1 %v2272_v25  ;;  %2183 = vset.pattern.permute.xlu0 %v2274_v41 }
 0x197   : > { %613 = vperm.xlu1 %2142, %v2508_v11   ;;  %735 = vperm.xlu0 %2183, %v2587_v42   ;;  %v1035_v63 = vadd.f32 %v1027_v55, %v978_v57  ;;  %v1864_v57 = vld [vmem:[%s3301_s3 + $0x148] sm:$0xff] }
 0x199   : > { %v1054_v59 = vpop.permute.xlu1 %1053  ;;  %v604_v62 = vpop.permute.xlu0 %603 }
 0x19a   : > { %v1084_v2 = vmul.f32 %v1887_v56, %v1054_v59  ;;  %v637_v44 = vmul.f32 %v604_v62, %v589_v38  ;;  %v1912_v38 = vld [vmem:[%s3301_s3 + $0x2c8] sm:$0xff] }
 0x19b   : > { %2145 = vset.pattern.permute.xlu1 %v2273_v40  ;;  %2186 = vset.pattern.permute.xlu0 %v2276_v46 }
 0x19c   : > { %v1092_v5 = vadd.f32 %v1084_v2, %v1035_v63  ;;  %780 = vperm.xlu1 %2145, %v2508_v11   ;;  %906 = vperm.xlu0 %2186, %v2587_v42   ;;  %v1872_v2 = vld [vmem:[%s3301_s3 + $0x188] sm:$0xff] }
 0x19e   : > { %v1168_v15 = vpop.permute.xlu1 %1167  ;;  %v1149_v16 = vadd.f32 %v1141_v4, %v1092_v5  ;;  %v773_v17 = vpop.permute.xlu0 %772 }
 0x19f   : > { %v1198_v18 = vmul.f32 %v1903_v9, %v1168_v15  ;;  %v800_v55 = vmul.f32 %v1848_v47, %v773_v17  ;;  %v1880_v9 = vld [vmem:[%s3301_s3 + $0x1c8] sm:$0xff] }
 0x1a0   : > { %2148 = vset.pattern.permute.xlu1 %v2277_v53  ;;  %2189 = vset.pattern.permute.xlu0 %v2281_v0  ;;  %v1888_v17 = vld [vmem:[%s3301_s3 + $0x208] sm:$0xff] }
 0x1a1   : > { %951 = vperm.xlu1 %2148, %v2508_v11   ;;  %1077 = vperm.xlu0 %2189, %v2587_v42   ;;  %v1206_v23 = vadd.f32 %v1198_v18, %v1149_v16 }
 0x1a3   : > { %v1225_v21 = vpop.permute.xlu1 %1224  ;;  %v830_v22 = vpop.permute.xlu0 %829 }
 0x1a4   : > { %v1255_v26 = vmul.f32 %v1911_v19, %v1225_v21  ;;  %v857_v58 = vmul.f32 %v1856_v52, %v830_v22 }
 0x1a5   : > { %2149 = vset.pattern.permute.xlu1 %v2279_v60  ;;  %2192 = vset.pattern.permute.xlu0 %v2283_v3 }
 0x1a6   : > { %v1263_v28 = vadd.f32 %v1255_v26, %v1206_v23  ;;  %1008 = vperm.xlu1 %2149, %v2508_v11   ;;  %1248 = vperm.xlu0 %2192, %v2587_v42   ;;  %v1904_v26 = vld [vmem:[%s3301_s3 + $0x288] sm:$0xff] }
 0x1a8   : > { %v2633_v30 = vpop.permute.xlu1 %1338  ;;  %v2635_v31 = vadd.f32 %v1312_v27, %v1263_v28  ;;  %v944_v32 = vpop.permute.xlu0 %943 }
 0x1a9   : > { %v971_v15 = vmul.f32 %v1872_v2, %v944_v32 }
 0x1aa   : > { %2151 = vset.pattern.permute.xlu1 %v2278_v54  ;;  %2196 = vset.pattern.permute.xlu0 %v2273_v40 }
 0x1ab   : > { %1122 = vperm.xlu1 %2151, %v2508_v11   ;;  %796 = vperm.xlu0 %2196, %v2631_v29  }
 0x1ad   : > { %v2641_v33 = vpop.permute.xlu1 %1395  ;;  %v1001_v35 = vpop.permute.xlu0 %1000 }
 0x1ae   : > { %v1028_v20 = vmul.f32 %v1880_v9, %v1001_v35 }
 0x1af   : > { %2152 = vset.pattern.permute.xlu1 %v2282_v1  ;;  %2199 = vset.pattern.permute.xlu0 %v2277_v53 }
 0x1b0   : > { %1179 = vperm.xlu1 %2152, %v2508_v11   ;;  %967 = vperm.xlu0 %2199, %v2631_v29  }
 0x1b2   : > { %v659_v36 = vpop.permute.xlu1 %658  ;;  %v1172_v37 = vpop.permute.xlu0 %1171 }
 0x1b3   : > { %v686_v39 = vmul.f32 %v1832_v6, %v659_v36  ;;  %v1199_v6 = vmul.f32 %v1904_v26, %v1172_v37  ;;  %v1928_v37 = vld [vmem:[%s3301_s3 + $0x348] sm:$0xff] }
 0x1b4   : > { %2154 = vset.pattern.permute.xlu1 %v2280_v61  ;;  %2202 = vset.pattern.permute.xlu0 %v2278_v54 }
 0x1b5   : > { %1293 = vperm.xlu1 %2154, %v2508_v11   ;;  %1138 = vperm.xlu0 %2202, %v2631_v29   ;;  %v694_v49 = vadd.f32 %v686_v39, %v637_v44 }
 0x1b7   : > { %v716_v48 = vpop.permute.xlu1 %715  ;;  %v1343_v51 = vpop.permute.xlu0 %1342 }
 0x1b8   : > { %v743_v50 = vmul.f32 %v1840_v43, %v716_v48 }
 0x1b9   : > { %2155 = vset.pattern.permute.xlu1 %v2284_v7  ;;  %2208 = vset.pattern.permute.xlu0 %v2280_v61 }
 0x1ba   : > { %v751_v56 = vadd.f32 %v743_v50, %v694_v49  ;;  %1350 = vperm.xlu1 %2155, %v2508_v11   ;;  %1305 = vperm.xlu0 %2208, %v2587_v42  }
 0x1bc   : > { %v808_v59 = vadd.f32 %v800_v55, %v751_v56  ;;  %v887_v62 = vpop.permute.xlu1 %886  ;;  %v2673_v63 = vpop.permute.xlu0 %608  ;;  %v1370_v55 = vmul.f32 %v1928_v37, %v1343_v51  ;;  %v1873_v37 = vld [vmem:[%s3301_s3 + $0x190] sm:$0xff] }
 0x1bd   : > { %v914_v4 = vmul.f32 %v1864_v57, %v887_v62 }
 0x1be   : > { %v865_v5 = vadd.f32 %v857_v58, %v808_v59  ;;  %2156 = vset.pattern.permute.xlu1 %v2272_v25  ;;  %2209 = vset.pattern.permute.xlu0 %v2286_v12 }
 0x1bf   : > { %618 = vperm.xlu1 %2156, %v2535_v13   ;;  %1452 = vperm.xlu0 %2209, %v2419_v34   ;;  %v1896_v34 = vld [vmem:[%s3301_s3 + $0x248] sm:$0xff] }
 0x1c0   : > { %v922_v16 = vadd.f32 %v914_v4, %v865_v5 }
 0x1c1   : > { %v1058_v18 = vpop.permute.xlu1 %1057  ;;  %v2688_v19 = vpop.permute.xlu0 %1004 }
 0x1c2   : > { %v979_v21 = vadd.f32 %v971_v15, %v922_v16  ;;  %v1085_v23 = vmul.f32 %v1888_v17, %v1058_v18  ;;  %v590_v16 = vld [vmem:[%s3301_s3 + $0x10] sm:$0xff] }
 0x1c3   : > { %2157 = vset.pattern.permute.xlu1 %v2271_v24  ;;  %1464 = vperm.xlu0 %2209, %v2508_v11   ;;  %v1833_v17 = vld [vmem:[%s3301_s3 + $0x50] sm:$0xff] }
 0x1c4   : > { %v1036_v22 = vadd.f32 %v1028_v20, %v979_v21  ;;  %670 = vperm.xlu1 %2157, %v2535_v13   ;;  %v1841_v20 = vld [vmem:[%s3301_s3 + $0x90] sm:$0xff]  ;;  %v638_v21 = vmul.f32 %v2673_v63, %v590_v16 }
 0x1c5   : > { %v1865_v63 = vld [vmem:[%s3301_s3 + $0x150] sm:$0xff] }
 0x1c6   : > { %v1093_v27 = vadd.f32 %v1085_v23, %v1036_v22  ;;  %v1115_v28 = vpop.permute.xlu1 %1114  ;;  %v2699_v32 = vpop.permute.xlu0 %1175  ;;  %v1849_v23 = vld [vmem:[%s3301_s3 + $0xd0] sm:$0xff] }
 0x1c7   : > { %v1142_v35 = vmul.f32 %v1896_v34, %v1115_v28  ;;  %2212 = vset.pattern.permute.xlu0 %v2285_v8  ;;  %v1857_v28 = vld [vmem:[%s3301_s3 + $0x110] sm:$0xff] }
 0x1c8   : > { %2159 = vset.pattern.permute.xlu1 %v2273_v40  ;;  %1407 = vperm.xlu0 %2212, %v2508_v11   ;;  %v1920_v11 = vld [vmem:[%s3301_s3 + $0x308] sm:$0xff]  ;;  %v1889_v16 = vld [vmem:[%s3301_s3 + $0x210] sm:$0xff] }
 0x1c9   : > { %v1150_v36 = vadd.f32 %v1142_v35, %v1093_v27  ;;  %784 = vperm.xlu1 %2159, %v2535_v13  }
 0x1cb   : > { %v1229_v39 = vpop.permute.xlu1 %1228  ;;  %v1207_v43 = vadd.f32 %v1199_v6, %v1150_v36  ;;  %v2708_v44 = vpop.permute.xlu0 %1346 }
 0x1cc   : > { %1415 = vperm.xlu0 %2212, %v2554_v14   ;;  %v1256_v47 = vmul.f32 %v1912_v38, %v1229_v39 }
 0x1cd   : > { %2160 = vset.pattern.permute.xlu1 %v2275_v45 }
 0x1ce   : > { %841 = vperm.xlu1 %2160, %v2535_v13   ;;  %v1264_v50 = vadd.f32 %v1256_v47, %v1207_v43 }
 0x1d0   : > { %v1286_v48 = vpop.permute.xlu1 %1285  ;;  %v2719_v49 = vpop.permute.xlu0 %666  ;;  %1419 = vperm.xlu0 %2212, %v2587_v42  }
 0x1d1   : > { %v1313_v52 = vmul.f32 %v1920_v11, %v1286_v48 }
 0x1d2   : > { %2161 = vset.pattern.permute.xlu1 %v2276_v46 }
 0x1d3   : > { %v1321_v56 = vadd.f32 %v1313_v52, %v1264_v50  ;;  %898 = vperm.xlu1 %2161, %v2535_v13   ;;  %v1881_v50 = vld [vmem:[%s3301_s3 + $0x1d0] sm:$0xff] }
 0x1d4   : > { %1423 = vperm.xlu0 %2212, %v2631_v29  }
 0x1d5   : > { %v2725_v57 = vpop.permute.xlu1 %1399  ;;  %v2727_v58 = vadd.f32 %v1370_v55, %v1321_v56  ;;  %v2729_v59 = vpop.permute.xlu0 %723 }
 0x1d7   : > { %2163 = vset.pattern.permute.xlu1 %v2279_v60 }
 0x1d8   : > { %1012 = vperm.xlu1 %2163, %v2535_v13   ;;  %2218 = vset.pattern.permute.xlu0 %v2286_v12 }
 0x1d9   : > { %1480 = vperm.xlu0 %2218, %v2631_v29  }
 0x1da   : > { %v2735_v51 = vpop.permute.xlu1 %1456  ;;  %v2737_v62 = vpop.permute.xlu0 %837 }
 0x1dc   : > { %2164 = vset.pattern.permute.xlu1 %v2281_v0 }
 0x1dd   : > { %1069 = vperm.xlu1 %2164, %v2535_v13  }
 0x1df   : > { %v663_v2 = vpop.permute.xlu1 %662  ;;  %v2741_v4 = vpop.permute.xlu0 %894 }
 0x1e0   : > { %v687_v22 = vmul.f32 %v1833_v17, %v663_v2 }
 0x1e1   : > { %2166 = vset.pattern.permute.xlu1 %v2282_v1 }
 0x1e2   : > { %1183 = vperm.xlu1 %2166, %v2535_v13   ;;  %v695_v35 = vadd.f32 %v687_v22, %v638_v21 }
 0x1e4   : > { %v720_v5 = vpop.permute.xlu1 %719  ;;  %v2745_v9 = vpop.permute.xlu0 %1065 }
 0x1e5   : > { %v744_v27 = vmul.f32 %v1841_v20, %v720_v5  ;;  %v1029_v5 = vmul.f32 %v1881_v50, %v2688_v19  ;;  %v1897_v19 = vld [vmem:[%s3301_s3 + $0x250] sm:$0xff] }
 0x1e6   : > { %2167 = vset.pattern.permute.xlu1 %v2283_v3 }
 0x1e7   : > { %1240 = vperm.xlu1 %2167, %v2535_v13   ;;  %v752_v36 = vadd.f32 %v744_v27, %v695_v35 }
 0x1e9   : > { %v777_v15 = vpop.permute.xlu1 %776  ;;  %v2755_v18 = vpop.permute.xlu0 %1236 }
 0x1ea   : > { %v801_v6 = vmul.f32 %v1849_v23, %v777_v15  ;;  %v1905_v23 = vld [vmem:[%s3301_s3 + $0x290] sm:$0xff] }
 0x1eb   : > { %2169 = vset.pattern.permute.xlu1 %v2272_v25 }
 0x1ec   : > { %623 = vperm.xlu1 %2169, %v2554_v14   ;;  %v809_v47 = vadd.f32 %v801_v6, %v752_v36  ;;  %v1200_v6 = vmul.f32 %v1905_v23, %v2699_v32  ;;  %v1913_v36 = vld [vmem:[%s3301_s3 + $0x2d0] sm:$0xff] }
 0x1ed   : > { %v1921_v32 = vld [vmem:[%s3301_s3 + $0x310] sm:$0xff] }
 0x1ee   : > { %v834_v34 = vpop.permute.xlu1 %833  ;;  %v2766_v26 = vpop.permute.xlu0 %727 }
 0x1ef   : > { %v858_v38 = vmul.f32 %v1857_v28, %v834_v34 }
 0x1f0   : > { %2170 = vset.pattern.permute.xlu1 %v2271_v24 }
 0x1f1   : > { %674 = vperm.xlu1 %2170, %v2554_v14   ;;  %v866_v48 = vadd.f32 %v858_v38, %v809_v47 }
 0x1f3   : > { %v891_v39 = vpop.permute.xlu1 %890  ;;  %v2776_v43 = vpop.permute.xlu0 %955 }
 0x1f4   : > { %v915_v11 = vmul.f32 %v1865_v63, %v891_v39 }
 0x1f5   : > { %2171 = vset.pattern.permute.xlu1 %v2274_v41 }
 0x1f6   : > { %731 = vperm.xlu1 %2171, %v2554_v14   ;;  %v923_v56 = vadd.f32 %v915_v11, %v866_v48 }
 0x1f8   : > { %v948_v52 = vpop.permute.xlu1 %947  ;;  %v2786_v55 = vpop.permute.xlu0 %1126 }
 0x1f9   : > { %v972_v2 = vmul.f32 %v1873_v37, %v948_v52  ;;  %v1929_v37 = vld [vmem:[%s3301_s3 + $0x350] sm:$0xff] }
 0x1fa   : > { %2172 = vset.pattern.permute.xlu1 %v2273_v40 }
 0x1fb   : > { %v980_v15 = vadd.f32 %v972_v2, %v923_v56  ;;  %788 = vperm.xlu1 %2172, %v2554_v14   ;;  %v1371_v2 = vmul.f32 %v1929_v37, %v2708_v44  ;;  %v591_v44 = vld [vmem:[%s3301_s3 + $0x18] sm:$0xff] }
 0x1fd   : > { %v1062_v17 = vpop.permute.xlu1 %1061  ;;  %v1037_v20 = vadd.f32 %v1029_v5, %v980_v15  ;;  %v2794_v21 = vpop.permute.xlu0 %1297 }
 0x1fe   : > { %v1086_v22 = vmul.f32 %v1889_v16, %v1062_v17 }
 0x1ff   : > { %2174 = vset.pattern.permute.xlu1 %v2276_v46 }
 0x200   : > { %902 = vperm.xlu1 %2174, %v2554_v14   ;;  %v1094_v28 = vadd.f32 %v1086_v22, %v1037_v20  ;;  %v1834_v20 = vld [vmem:[%s3301_s3 + $0x58] sm:$0xff] }
 0x201   : > { %v1842_v22 = vld [vmem:[%s3301_s3 + $0x98] sm:$0xff] }
 0x202   : > { %v1119_v34 = vpop.permute.xlu1 %1118  ;;  %v2804_v27 = vpop.permute.xlu0 %845 }
 0x203   : > { %v1143_v35 = vmul.f32 %v1897_v19, %v1119_v34  ;;  %v688_v34 = vmul.f32 %v1834_v20, %v2719_v49 }
 0x204   : > { %2175 = vset.pattern.permute.xlu1 %v2277_v53 }
 0x205   : > { %v1151_v63 = vadd.f32 %v1143_v35, %v1094_v28  ;;  %959 = vperm.xlu1 %2175, %v2554_v14   ;;  %v745_v35 = vmul.f32 %v1842_v22, %v2729_v59  ;;  %v1866_v59 = vld [vmem:[%s3301_s3 + $0x158] sm:$0xff] }
 0x207   : > { %v1233_v38 = vpop.permute.xlu1 %1232  ;;  %v1208_v39 = vadd.f32 %v1200_v6, %v1151_v63  ;;  %v2812_v47 = vpop.permute.xlu0 %1016  ;;  %v1850_v63 = vld [vmem:[%s3301_s3 + $0xd8] sm:$0xff] }
 0x208   : > { %v1257_v11 = vmul.f32 %v1913_v36, %v1233_v38  ;;  %v1858_v36 = vld [vmem:[%s3301_s3 + $0x118] sm:$0xff] }
 0x209   : > { %2177 = vset.pattern.permute.xlu1 %v2281_v0 }
 0x20a   : > { %1073 = vperm.xlu1 %2177, %v2554_v14   ;;  %v1265_v52 = vadd.f32 %v1257_v11, %v1208_v39 }
 0x20c   : > { %v1290_v48 = vpop.permute.xlu1 %1289  ;;  %v2822_v50 = vpop.permute.xlu0 %1187 }
 0x20d   : > { %v1314_v56 = vmul.f32 %v1921_v32, %v1290_v48  ;;  %v859_v32 = vmul.f32 %v1858_v36, %v2737_v62  ;;  %v1874_v48 = vld [vmem:[%s3301_s3 + $0x198] sm:$0xff] }
 0x20e   : > { %2178 = vset.pattern.permute.xlu1 %v2278_v54  ;;  %v1890_v62 = vld [vmem:[%s3301_s3 + $0x218] sm:$0xff] }
 0x20f   : > { %v1322_v5 = vadd.f32 %v1314_v56, %v1265_v52  ;;  %1130 = vperm.xlu1 %2178, %v2554_v14   ;;  %v916_v52 = vmul.f32 %v1866_v59, %v2741_v4 }
 0x211   : > { %v2827_v15 = vpop.permute.xlu1 %1403  ;;  %v2829_v16 = vadd.f32 %v1371_v2, %v1322_v5  ;;  %v2831_v17 = vpop.permute.xlu0 %678 }
 0x213   : > { %2180 = vset.pattern.permute.xlu1 %v2283_v3 }
 0x214   : > { %1244 = vperm.xlu1 %2180, %v2554_v14  }
 0x216   : > { %v614_v19 = vpop.permute.xlu1 %613  ;;  %v2844_v23 = vpop.permute.xlu0 %735 }
 0x217   : > { %v639_v28 = vmul.f32 %v614_v19, %v591_v44 }
 0x218   : > { %2181 = vset.pattern.permute.xlu1 %v2272_v25 }
 0x219   : > { %v696_v6 = vadd.f32 %v688_v34, %v639_v28  ;;  %628 = vperm.xlu1 %2181, %v2587_v42   ;;  %v1087_v28 = vmul.f32 %v1890_v62, %v2745_v9  ;;  %v1914_v9 = vld [vmem:[%s3301_s3 + $0x2d8] sm:$0xff]  ;;  %v1927_v62 = vld [vmem:[%s3301_s3 + $0x340] sm:$0xff] }
 0x21b   : > { %v781_v38 = vpop.permute.xlu1 %780  ;;  %v753_v39 = vadd.f32 %v745_v35, %v696_v6  ;;  %v2856_v11 = vpop.permute.xlu0 %906  ;;  %v1898_v6 = vld [vmem:[%s3301_s3 + $0x258] sm:$0xff] }
 0x21c   : > { %v802_v49 = vmul.f32 %v1850_v63, %v781_v38 }
 0x21d   : > { %2184 = vset.pattern.permute.xlu1 %v2273_v40  ;;  %v1882_v40 = vld [vmem:[%s3301_s3 + $0x1d8] sm:$0xff] }
 0x21e   : > { %v810_v37 = vadd.f32 %v802_v49, %v753_v39  ;;  %792 = vperm.xlu1 %2184, %v2587_v42  }
 0x220   : > { %v867_v56 = vadd.f32 %v859_v32, %v810_v37  ;;  %v952_v2 = vpop.permute.xlu1 %951  ;;  %v2868_v5 = vpop.permute.xlu0 %1077 }
 0x221   : > { %v973_v44 = vmul.f32 %v1874_v48, %v952_v2  ;;  %v1258_v48 = vmul.f32 %v1914_v9, %v2755_v18  ;;  %v1930_v18 = vld [vmem:[%s3301_s3 + $0x358] sm:$0xff] }
 0x222   : > { %v924_v20 = vadd.f32 %v916_v52, %v867_v56  ;;  %2185 = vset.pattern.permute.xlu1 %v2275_v45  ;;  %v1922_v56 = vld [vmem:[%s3301_s3 + $0x318] sm:$0xff] }
 0x223   : > { %849 = vperm.xlu1 %2185, %v2587_v42  }
 0x224   : > { %v981_v19 = vadd.f32 %v973_v44, %v924_v20 }
 0x225   : > { %v1009_v22 = vpop.permute.xlu1 %1008  ;;  %v2878_v4 = vpop.permute.xlu0 %1248 }
 0x226   : > { %v1030_v34 = vmul.f32 %v1882_v40, %v1009_v22  ;;  %v1935_v22 = vld [vmem:[%s3301_s3 + $0x380] sm:$0xff] }
 0x227   : > { %2187 = vset.pattern.permute.xlu1 %v2277_v53  ;;  %v1906_v53 = vld [vmem:[%s3301_s3 + $0x298] sm:$0xff] }
 0x228   : > { %v1038_v35 = vadd.f32 %v1030_v34, %v981_v19  ;;  %963 = vperm.xlu1 %2187, %v2587_v42   ;;  %v1936_v19 = vld [vmem:[%s3301_s3 + $0x388] sm:$0xff]  ;;  %v1369_v34 = vmul.f32 %v1927_v62, %v2633_v30  ;;  %v1943_v30 = vld [vmem:[%s3301_s3 + $0x3c0] sm:$0xff] }
 0x22a   : > { %v1123_v63 = vpop.permute.xlu1 %1122  ;;  %v1095_v36 = vadd.f32 %v1087_v28, %v1038_v35  ;;  %v2886_v38 = vpop.permute.xlu0 %796 }
 0x22b   : > { %v1144_v39 = vmul.f32 %v1898_v6, %v1123_v63  ;;  %v1944_v6 = vld [vmem:[%s3301_s3 + $0x3c8] sm:$0xff] }
 0x22c   : > { %2188 = vset.pattern.permute.xlu1 %v2279_v60  ;;  %v1484_v9 = vmul.f32 %v1944_v6, %v2735_v51  ;;  %v1843_v51 = vld [vmem:[%s3301_s3 + $0xa0] sm:$0xff] }
 0x22d   : > { %v1152_v49 = vadd.f32 %v1144_v39, %v1095_v36  ;;  %1020 = vperm.xlu1 %2188, %v2587_v42   ;;  %v1426_v36 = vmul.f32 %v1935_v22, %v2641_v33  ;;  %v1427_v39 = vmul.f32 %v1936_v19, %v2725_v57 }
 0x22f   : > { %v1180_v59 = vpop.permute.xlu1 %1179  ;;  %v2896_v32 = vpop.permute.xlu0 %967  ;;  %v1435_v33 = vadd.f32 %v1427_v39, %v2727_v58 }
 0x230   : > { %v1201_v37 = vmul.f32 %v1906_v53, %v1180_v59  ;;  %v1377_v53 = vadd.f32 %v1369_v34, %v2635_v31  ;;  %v1835_v31 = vld [vmem:[%s3301_s3 + $0x60] sm:$0xff] }
 0x231   : > { %2190 = vset.pattern.permute.xlu1 %v2278_v54 }
 0x232   : > { %v1209_v52 = vadd.f32 %v1201_v37, %v1152_v49  ;;  %1134 = vperm.xlu1 %2190, %v2587_v42  }
 0x234   : > { %v1294_v2 = vpop.permute.xlu1 %1293  ;;  %v1266_v20 = vadd.f32 %v1258_v48, %v1209_v52  ;;  %v2904_v44 = vpop.permute.xlu0 %1138  ;;  %v1434_v48 = vadd.f32 %v1426_v36, %v1377_v53  ;;  %v592_v52 = vld [vmem:[%s3301_s3 + $0x20] sm:$0xff] }
 0x235   : > { %v1315_v40 = vmul.f32 %v1922_v56, %v1294_v2 }
 0x236   : > { %2191 = vset.pattern.permute.xlu1 %v2282_v1 }
 0x237   : > { %v1323_v54 = vadd.f32 %v1315_v40, %v1266_v20  ;;  %1191 = vperm.xlu1 %2191, %v2587_v42   ;;  %v746_v40 = vmul.f32 %v1843_v51, %v2766_v26 }
 0x239   : > { %v1351_v28 = vpop.permute.xlu1 %1350  ;;  %v2921_v35 = vpop.permute.xlu0 %1305 }
 0x23a   : > { %v1372_v63 = vmul.f32 %v1930_v18, %v1351_v28 }
 0x23b   : > { %2193 = vset.pattern.permute.xlu1 %v2272_v25  ;;  %v1492_v25 = vadd.f32 %v1484_v9, %v1435_v33 }
 0x23c   : > { %v2929_v49 = vadd.f32 %v1372_v63, %v1323_v54  ;;  %633 = vperm.xlu1 %2193, %v2631_v29   ;;  %v1851_v54 = vld [vmem:[%s3301_s3 + $0xe0] sm:$0xff] }
 0x23d   : > { %v1867_v63 = vld [vmem:[%s3301_s3 + $0x160] sm:$0xff] }
 0x23e   : > { %v619_v59 = vpop.permute.xlu1 %618  ;;  %v1453_v37 = vpop.permute.xlu0 %1452 }
 0x23f   : > { %v1483_v57 = vmul.f32 %v1943_v30, %v1453_v37 }
 0x240   : > { %2194 = vset.pattern.permute.xlu1 %v2271_v24  ;;  %v640_v24 = vmul.f32 %v619_v59, %v592_v52 }
 0x241   : > { %v1491_v56 = vadd.f32 %v1483_v57, %v1434_v48  ;;  %682 = vperm.xlu1 %2194, %v2631_v29  }
 0x243   : > { %v2949_v58 = vadd.f32 %v1492_v25, %v1491_v56  ;;  %v671_v2 = vpop.permute.xlu1 %670 }
 0x244   : > { %v689_v20 = vmul.f32 %v1835_v31, %v671_v2 }
 0x245   : > { %2195 = vset.pattern.permute.xlu1 %v2274_v41  ;;  %v1859_v41 = vld [vmem:[%s3301_s3 + $0x120] sm:$0xff] }
 0x246   : > { %v697_v62 = vadd.f32 %v689_v20, %v640_v24  ;;  %739 = vperm.xlu1 %2195, %v2631_v29  }
 0x248   : > { %v785_v18 = vpop.permute.xlu1 %784  ;;  %v754_v22 = vadd.f32 %v746_v40, %v697_v62 }
 0x249   : > { %v803_v19 = vmul.f32 %v1851_v54, %v785_v18 }
 0x24a   : > { %2197 = vset.pattern.permute.xlu1 %v2275_v45  ;;  %v1875_v45 = vld [vmem:[%s3301_s3 + $0x1a0] sm:$0xff] }
 0x24b   : > { %v811_v34 = vadd.f32 %v803_v19, %v754_v22  ;;  %853 = vperm.xlu1 %2197, %v2631_v29   ;;  %v974_v30 = vmul.f32 %v1875_v45, %v2776_v43  ;;  %v1899_v43 = vld [vmem:[%s3301_s3 + $0x260] sm:$0xff]  ;;  %v593_v22 = vld [vmem:[%s3301_s3 + $0x28] sm:$0xff] }
 0x24c   : > { %v1145_v25 = vmul.f32 %v1899_v43, %v2786_v55  ;;  %v1923_v55 = vld [vmem:[%s3301_s3 + $0x320] sm:$0xff]  ;;  %v1836_v19 = vld [vmem:[%s3301_s3 + $0x68] sm:$0xff] }
 0x24d   : > { %v842_v26 = vpop.permute.xlu1 %841  ;;  %v1316_v40 = vmul.f32 %v1923_v55, %v2794_v21  ;;  %v1852_v45 = vld [vmem:[%s3301_s3 + $0xe8] sm:$0xff] }
 0x24e   : > { %v860_v28 = vmul.f32 %v1859_v41, %v842_v26 }
 0x24f   : > { %2198 = vset.pattern.permute.xlu1 %v2276_v46  ;;  %v1883_v46 = vld [vmem:[%s3301_s3 + $0x1e0] sm:$0xff] }
 0x250   : > { %v868_v6 = vadd.f32 %v860_v28, %v811_v34  ;;  %910 = vperm.xlu1 %2198, %v2631_v29   ;;  %v1844_v28 = vld [vmem:[%s3301_s3 + $0xa8] sm:$0xff] }
 0x252   : > { %v899_v36 = vpop.permute.xlu1 %898 }
 0x253   : > { %v917_v39 = vmul.f32 %v1867_v63, %v899_v36 }
 0x254   : > { %2200 = vset.pattern.permute.xlu1 %v2279_v60  ;;  %v1891_v60 = vld [vmem:[%s3301_s3 + $0x220] sm:$0xff] }
 0x255   : > { %v925_v53 = vadd.f32 %v917_v39, %v868_v6  ;;  %1024 = vperm.xlu1 %2200, %v2631_v29  }
 0x257   : > { %v1013_v9 = vpop.permute.xlu1 %1012  ;;  %v982_v59 = vadd.f32 %v974_v30, %v925_v53 }
 0x258   : > { %v1031_v37 = vmul.f32 %v1883_v46, %v1013_v9  ;;  %v1868_v46 = vld [vmem:[%s3301_s3 + $0x168] sm:$0xff] }
 0x259   : > { %2201 = vset.pattern.permute.xlu1 %v2281_v0  ;;  %v1907_v0 = vld [vmem:[%s3301_s3 + $0x2a0] sm:$0xff] }
 0x25a   : > { %v1039_v48 = vadd.f32 %v1031_v37, %v982_v59  ;;  %1081 = vperm.xlu1 %2201, %v2631_v29  }
 0x25c   : > { %v1070_v33 = vpop.permute.xlu1 %1069 }
 0x25d   : > { %v1088_v57 = vmul.f32 %v1891_v60, %v1070_v33 }
 0x25e   : > { %2203 = vset.pattern.permute.xlu1 %v2282_v1  ;;  %v1915_v1 = vld [vmem:[%s3301_s3 + $0x2e0] sm:$0xff] }
 0x25f   : > { %v1096_v52 = vadd.f32 %v1088_v57, %v1039_v48  ;;  %1195 = vperm.xlu1 %2203, %v2631_v29  }
 0x261   : > { %v1184_v56 = vpop.permute.xlu1 %1183  ;;  %v1153_v31 = vadd.f32 %v1145_v25, %v1096_v52 }
 0x262   : > { %v1202_v51 = vmul.f32 %v1907_v0, %v1184_v56 }
 0x263   : > { %2204 = vset.pattern.permute.xlu1 %v2280_v61 }
 0x264   : > { %v1210_v2 = vadd.f32 %v1202_v51, %v1153_v31  ;;  %1301 = vperm.xlu1 %2204, %v2554_v14   ;;  %v1900_v31 = vld [vmem:[%s3301_s3 + $0x268] sm:$0xff] }
 0x266   : > { %v1241_v24 = vpop.permute.xlu1 %1240 }
 0x267   : > { %v1259_v20 = vmul.f32 %v1915_v1, %v1241_v24 }
 0x268   : > { %2205 = vset.pattern.permute.xlu1 %v2284_v7 }
 0x269   : > { %v1267_v62 = vadd.f32 %v1259_v20, %v1210_v2  ;;  %1354 = vperm.xlu1 %2205, %v2535_v13  }
 0x26b   : > { %v624_v54 = vpop.permute.xlu1 %623  ;;  %v3001_v18 = vadd.f32 %v1316_v40, %v1267_v62  ;;  %v1837_v40 = vld [vmem:[%s3301_s3 + $0x70] sm:$0xff] }
 0x26c   : > { %v641_v21 = vmul.f32 %v624_v54, %v593_v22  ;;  %v2287_v54 = vmov 0.0   ;;  %v691_v22 = vmul.f32 %v1837_v40, %v2831_v17 }
 0x26d   : > { %2206 = vset.pattern.permute.xlu1 %v2286_v12  ;;  %2030 = vmatprep.subr.bf16.mxu1 %v2287_v54 }
 0x26e   : > { %1460 = vperm.xlu1 %2206, %v2489_v10   ;;  %2050 = vmatprep.subr.bf16.mxu0 %v2287_v54 }
 0x26f   : > { %2046 = vmatprep.mubr.msk.bf16.mxu1 %vm2288_vm0, %v2287_v54  ;;  %2066 = vmatprep.mubr.msk.bf16.mxu0 %vm2288_vm0, %v2287_v54 }
 0x270   : > { %v675_v34 = vpop.permute.xlu1 %674 }
 0x271   : > { %v690_v41 = vmul.f32 %v1836_v19, %v675_v34  ;;  %v2248_v34 = vld [vmem:[%s3303_s5 + $0x8] sm:$0xff]  }
 0x272   : > { %2207 = vset.pattern.permute.xlu1 %v2283_v3  ;;  %v1860_v3 = vld [vmem:[%s3301_s3 + $0x128] sm:$0xff] }
 0x273   : > { %v698_v26 = vadd.f32 %v690_v41, %v641_v21  ;;  %1252 = vperm.xlu1 %2207, %v2631_v29   ;;  %v861_v30 = vmul.f32 %v1860_v3, %v2804_v27  ;;  %v1884_v27 = vld [vmem:[%s3301_s3 + $0x1e8] sm:$0xff]  ;;  %v1853_v41 = vld [vmem:[%s3301_s3 + $0xf0] sm:$0xff] }
 0x274   : > { %v1032_v33 = vmul.f32 %v1884_v27, %v2812_v47  ;;  %v1908_v47 = vld [vmem:[%s3301_s3 + $0x2a8] sm:$0xff]  ;;  %v2253_v27 = vld [vmem:[%s3303_s5 + $0x30] sm:$0xff]  }
 0x275   : > { %v732_v6 = vpop.permute.xlu1 %731  ;;  %v1203_v1 = vmul.f32 %v1908_v47, %v2822_v50 }
 0x276   : > { %v747_v63 = vmul.f32 %v1844_v28, %v732_v6  ;;  %v2249_v6 = vld [vmem:[%s3303_s5 + $0x10] sm:$0xff]  }
 0x277   : > { %2210 = vset.pattern.permute.xlu1 %v2284_v7 }
 0x278   : > { %v755_v10 = vadd.f32 %v747_v63, %v698_v26  ;;  %1358 = vperm.xlu1 %2210, %v2554_v14  }
 0x27a   : > { %v789_v36 = vpop.permute.xlu1 %788 }
 0x27b   : > { %v804_v39 = vmul.f32 %v1852_v45, %v789_v36  ;;  %v1869_v45 = vld [vmem:[%s3301_s3 + $0x170] sm:$0xff] }
 0x27c   : > { %2211 = vset.pattern.permute.xlu1 %v2285_v8  ;;  %v1876_v8 = vld [vmem:[%s3301_s3 + $0x1a8] sm:$0xff] }
 0x27d   : > { %v812_v53 = vadd.f32 %v804_v39, %v755_v10  ;;  %1411 = vperm.xlu1 %2211, %v2535_v13   ;;  %v919_v39 = vmul.f32 %v1869_v45, %v2856_v11  ;;  %v1945_v45 = vld [vmem:[%s3301_s3 + $0x3d0] sm:$0xff] }
 0x27f   : > { %v903_v9 = vpop.permute.xlu1 %902  ;;  %v869_v59 = vadd.f32 %v861_v30, %v812_v53  ;;  %v1877_v53 = vld [vmem:[%s3301_s3 + $0x1b0] sm:$0xff] }
 0x280   : > { %v918_v37 = vmul.f32 %v1868_v46, %v903_v9  ;;  %v2251_v46 = vld [vmem:[%s3303_s5 + $0x20] sm:$0xff]  }
 0x281   : > { %2213 = vset.pattern.permute.xlu1 %v2280_v61  ;;  %v1892_v61 = vld [vmem:[%s3301_s3 + $0x228] sm:$0xff] }
 0x282   : > { %v926_v48 = vadd.f32 %v918_v37, %v869_v59  ;;  %1309 = vperm.xlu1 %2213, %v2631_v29  }
 0x284   : > { %v960_v60 = vpop.permute.xlu1 %959 }
 0x285   : > { %v975_v43 = vmul.f32 %v1876_v8, %v960_v60  ;;  %v1885_v8 = vld [vmem:[%s3301_s3 + $0x1f0] sm:$0xff] }
 0x286   : > { %2214 = vset.pattern.permute.xlu1 %v2284_v7  ;;  %v1893_v60 = vld [vmem:[%s3301_s3 + $0x230] sm:$0xff] }
 0x287   : > { %v983_v57 = vadd.f32 %v975_v43, %v926_v48  ;;  %1362 = vperm.xlu1 %2214, %v2587_v42   ;;  %v2252_v48 = vld [vmem:[%s3303_s5 + $0x28] sm:$0xff]  }
 0x289   : > { %v1074_v25 = vpop.permute.xlu1 %1073  ;;  %v1040_v52 = vadd.f32 %v1032_v33, %v983_v57  ;;  %v1090_v57 = vmul.f32 %v1893_v60, %v2868_v5  ;;  %v1909_v5 = vld [vmem:[%s3301_s3 + $0x2b0] sm:$0xff] }
 0x28a   : > { %v1089_v0 = vmul.f32 %v1892_v61, %v1074_v25  ;;  %v1901_v25 = vld [vmem:[%s3301_s3 + $0x270] sm:$0xff] }
 0x28b   : > { %2215 = vset.pattern.permute.xlu1 %v2286_v12 }
 0x28c   : > { %v1097_v56 = vadd.f32 %v1089_v0, %v1040_v52  ;;  %1468 = vperm.xlu1 %2215, %v2535_v13   ;;  %v1916_v13 = vld [vmem:[%s3301_s3 + $0x2e8] sm:$0xff]  ;;  %v2254_v52 = vld [vmem:[%s3303_s5 + $0x38] sm:$0xff]  }
 0x28e   : > { %v1131_v51 = vpop.permute.xlu1 %1130 }
 0x28f   : > { %v1146_v2 = vmul.f32 %v1900_v31, %v1131_v51 }
 0x290   : > { %2216 = vset.pattern.permute.xlu1 %v2284_v7  ;;  %v2247_v7 = vld [vmem:[%s3303_s5] sm:$0xff]  }
 0x291   : > { %v1154_v55 = vadd.f32 %v1146_v2, %v1097_v56  ;;  %1366 = vperm.xlu1 %2216, %v2631_v29   ;;  %v594_v29 = vld [vmem:[%s3301_s3 + $0x30] sm:$0xff]  ;;  %2031 = vmatpush3.bf16.msra.mxu1 %v2247_v7  ;;  %v2255_v2 = vld [vmem:[%s3305_s7] sm:$0xff]  }
 0x292   : > { %2032 = vmatprep.subr.bf16.mxu1 %v2287_v54  ;;  %2051 = vmatpush3.bf16.msra.mxu0 %v2255_v2  ;;  %v2259_v7 = vld [vmem:[%s3305_s7 + $0x20] sm:$0xff]   ;;  %v1886_v2 = vld [vmem:[%s3301_s3 + $0x1f8] sm:$0xff] }
 0x293   : > { %v1245_v24 = vpop.permute.xlu1 %1244  ;;  %v1211_v20 = vadd.f32 %v1203_v1, %v1154_v55  ;;  %v2256_v55 = vld [vmem:[%s3305_s7 + $0x8] sm:$0xff]   ;;  %2052 = vmatprep.subr.bf16.mxu0 %v2287_v54 }
 0x294   : > { %v1260_v62 = vmul.f32 %v1916_v13, %v1245_v24 }
 0x295   : > { %2217 = vset.pattern.permute.xlu1 %v2286_v12  ;;  %v1845_v12 = vld [vmem:[%s3301_s3 + $0xb0] sm:$0xff]  ;;  %2033 = vmatpush3.bf16.msra.mxu1 %v2248_v34 }
 0x296   : > { %v3065_v50 = vadd.f32 %v1260_v62, %v1211_v20  ;;  %1472 = vperm.xlu1 %2217, %v2554_v14   ;;  %v748_v21 = vmul.f32 %v1845_v12, %v2844_v23  ;;  %2034 = vmatprep.subr.bf16.mxu1 %v2287_v54  ;;  %v2250_v23 = vld [vmem:[%s3303_s5 + $0x18] sm:$0xff]   ;;  %v2257_v20 = vld [vmem:[%s3305_s7 + $0x10] sm:$0xff]  }
 0x297   : > { %2053 = vmatpush3.bf16.msra.mxu0 %v2256_v55  ;;  %v2258_v62 = vld [vmem:[%s3305_s7 + $0x18] sm:$0xff]  }
 0x298   : > { %v629_v19 = vpop.permute.xlu1 %628  ;;  %2054 = vmatprep.subr.bf16.mxu0 %v2287_v54 }
 0x299   : > { %v642_v14 = vmul.f32 %v629_v19, %v594_v29  ;;  %2035 = vmatpush3.bf16.msra.mxu1 %v2249_v6  ;;  %v2261_v19 = vld [vmem:[%s3305_s7 + $0x30] sm:$0xff]   ;;  %v1938_v6 = vld [vmem:[%s3301_s3 + $0x398] sm:$0xff] }
 0x29a   : > { %1476 = vperm.xlu1 %2217, %v2587_v42   ;;  %v1861_v42 = vld [vmem:[%s3301_s3 + $0x130] sm:$0xff]  ;;  %2036 = vmatprep.subr.bf16.mxu1 %v2287_v54 }
 0x29b   : > { %v699_v17 = vadd.f32 %v691_v22, %v642_v14  ;;  %2055 = vmatpush3.bf16.msra.mxu0 %v2257_v20  ;;  %v2260_v22 = vld [vmem:[%s3305_s7 + $0x28] sm:$0xff]  }
 0x29c   : > { %2056 = vmatprep.subr.bf16.mxu0 %v2287_v54 }
 0x29d   : > { %v793_v26 = vpop.permute.xlu1 %792  ;;  %v756_v28 = vadd.f32 %v748_v21, %v699_v17  ;;  %2037 = vmatpush3.bf16.msra.mxu1 %v2250_v23  ;;  %v1838_v23 = vld [vmem:[%s3301_s3 + $0x78] sm:$0xff] }
 0x29e   : > { %v805_v63 = vmul.f32 %v1853_v41, %v793_v26  ;;  %2038 = vmatprep.subr.bf16.mxu1 %v2287_v54  ;;  %v1465_v41 = vpop.permute.xlu0 %1464 }
 0x29f   : > { %2057 = vmatpush3.bf16.msra.mxu0 %v2258_v62  ;;  %v1931_v62 = vld [vmem:[%s3301_s3 + $0x360] sm:$0xff] }
 0x2a0   : > { %v813_v10 = vadd.f32 %v805_v63, %v756_v28  ;;  %2058 = vmatprep.subr.bf16.mxu0 %v2287_v54  ;;  %v1937_v28 = vld [vmem:[%s3301_s3 + $0x390] sm:$0xff] }
 0x2a1   : > { %2039 = vmatpush3.bf16.msra.mxu1 %v2251_v46 }
 0x2a2   : > { %v850_v3 = vpop.permute.xlu1 %849  ;;  %2040 = vmatprep.subr.bf16.mxu1 %v2287_v54  ;;  %v1408_v63 = vpop.permute.xlu0 %1407 }
 0x2a3   : > { %v862_v36 = vmul.f32 %v1861_v42, %v850_v3  ;;  %2059 = vmatpush3.bf16.msra.mxu0 %v2259_v7  ;;  %v1428_v42 = vmul.f32 %v1937_v28, %v2827_v15  ;;  %v595_v3 = vld [vmem:[%s3301_s3 + $0x38] sm:$0xff]  ;;  %v1924_v28 = vld [vmem:[%s3301_s3 + $0x328] sm:$0xff] }
 0x2a4   : > { %2060 = vmatprep.subr.bf16.mxu0 %v2287_v54  ;;  %v1946_v15 = vld [vmem:[%s3301_s3 + $0x3d8] sm:$0xff] }
 0x2a5   : > { %v870_v30 = vadd.f32 %v862_v36, %v813_v10  ;;  %2041 = vmatpush3.bf16.msra.mxu1 %v2252_v48  ;;  %v1846_v36 = vld [vmem:[%s3301_s3 + $0xb8] sm:$0xff]  ;;  %v1486_v48 = vmul.f32 %v1946_v15, %v1465_v41 }
 0x2a6   : > { %2042 = vmatprep.subr.bf16.mxu1 %v2287_v54  ;;  %v1910_v41 = vld [vmem:[%s3301_s3 + $0x2b8] sm:$0xff] }
 0x2a7   : > { %v964_v9 = vpop.permute.xlu1 %963  ;;  %v927_v59 = vadd.f32 %v919_v39, %v870_v30  ;;  %2061 = vmatpush3.bf16.msra.mxu0 %v2260_v22 }
 0x2a8   : > { %v976_v37 = vmul.f32 %v1877_v53, %v964_v9  ;;  %2062 = vmatprep.subr.bf16.mxu0 %v2287_v54  ;;  %v1436_v53 = vadd.f32 %v1428_v42, %v2829_v16  ;;  %v1862_v16 = vld [vmem:[%s3301_s3 + $0x138] sm:$0xff] }
 0x2a9   : > { %2043 = vmatpush3.bf16.msra.mxu1 %v2253_v27  ;;  %v1854_v27 = vld [vmem:[%s3301_s3 + $0xf8] sm:$0xff] }
 0x2aa   : > { %v984_v11 = vadd.f32 %v976_v37, %v927_v59  ;;  %2044 = vmatprep.subr.bf16.mxu1 %v2287_v54  ;;  %v1918_v42 = vld [vmem:[%s3301_s3 + $0x2f8] sm:$0xff] }
 0x2ab   : > { %2063 = vmatpush3.bf16.msra.mxu0 %v2261_v19 }
 0x2ac   : > { %v1021_v43 = vpop.permute.xlu1 %1020  ;;  %2064 = vmatprep.subr.bf16.mxu0 %v2287_v54  ;;  %v1429_v54 = vmul.f32 %v1938_v6, %v1408_v63  ;;  %v1947_v6 = vld [vmem:[%s3301_s3 + $0x3e0] sm:$0xff]  ;;  %v1917_v63 = vld [vmem:[%s3301_s3 + $0x2f0] sm:$0xff] }
 0x2ad   : > { %v1033_v33 = vmul.f32 %v1885_v8, %v1021_v43  ;;  %2045 = vmatpush3.bf16.msra.mxu1 %v2254_v52 }
 0x2ae   : > { %v1437_v46 = vadd.f32 %v1429_v54, %v2929_v49  ;;  %v1932_v54 = vld [vmem:[%s3301_s3 + $0x368] sm:$0xff] }
 0x2af   : > { %v1041_v61 = vadd.f32 %v1033_v33, %v984_v11 }
 0x2b0   : > { %v1494_v60 = vadd.f32 %v1486_v48, %v1437_v46 }
 0x2b1   : > { %v1135_v0 = vpop.permute.xlu1 %1134  ;;  %v1098_v56 = vadd.f32 %v1090_v57, %v1041_v61  ;;  %v806_v61 = vmul.f32 %v1854_v27, %v2886_v38 }
 0x2b2   : > { %v1147_v31 = vmul.f32 %v1901_v25, %v1135_v0  ;;  %v1870_v25 = vld [vmem:[%s3301_s3 + $0x178] sm:$0xff] }
 0x2b4   : > { %v1155_v47 = vadd.f32 %v1147_v31, %v1098_v56 }
 0x2b6   : > { %v1192_v51 = vpop.permute.xlu1 %1191 }
 0x2b7   : > { %v1204_v1 = vmul.f32 %v1909_v5, %v1192_v51 }
 0x2b9   : > { %v3141_v13 = vadd.f32 %v1204_v1, %v1155_v47  ;;  %v1894_v1 = vld [vmem:[%s3301_s3 + $0x238] sm:$0xff] }
 0x2bb   : > { %v634_v24 = vpop.permute.xlu1 %633 }
 0x2bc   : > { %v643_v59 = vmul.f32 %v634_v24, %v595_v3 }
 0x2c0   : > { %v683_v40 = vpop.permute.xlu1 %682 }
 0x2c1   : > { %v692_v39 = vmul.f32 %v1838_v23, %v683_v40 }
 0x2c3   : > { %v700_v8 = vadd.f32 %v692_v39, %v643_v59  ;;  %v1261_v39 = vmul.f32 %v1917_v63, %v2878_v4  ;;  %v1934_v4 = vld [vmem:[%s3301_s3 + $0x378] sm:$0xff] }
 0x2c5   : > { %v740_v29 = vpop.permute.xlu1 %739 }
 0x2c6   : > { %v749_v37 = vmul.f32 %v1846_v36, %v740_v29  ;;  %v1939_v29 = vld [vmem:[%s3301_s3 + $0x3a0] sm:$0xff] }
 0x2c8   : > { %v757_v57 = vadd.f32 %v749_v37, %v700_v8 }
 0x2ca   : > { %v854_v12 = vpop.permute.xlu1 %853  ;;  %v814_v52 = vadd.f32 %v806_v61, %v757_v57 }
 0x2cb   : > { %v863_v0 = vmul.f32 %v1862_v16, %v854_v12 }
 0x2cd   : > { %v871_v47 = vadd.f32 %v863_v0, %v814_v52 }
 0x2cf   : > { %v911_v14 = vpop.permute.xlu1 %910 }
 0x2d0   : > { %v920_v31 = vmul.f32 %v1870_v25, %v911_v14  ;;  %v1948_v25 = vld [vmem:[%s3301_s3 + $0x3e8] sm:$0xff] }
 0x2d2   : > { %v928_v51 = vadd.f32 %v920_v31, %v871_v47 }
 0x2d4   : > { %v1025_v34 = vpop.permute.xlu1 %1024 }
 0x2d5   : > { %v1034_v24 = vmul.f32 %v1886_v2, %v1025_v34 }
 0x2d9   : > { %v1082_v21 = vpop.permute.xlu1 %1081 }
 0x2da   : > { %v1091_v40 = vmul.f32 %v1894_v1, %v1082_v21  ;;  %v1416_v21 = vpop.permute.xlu0 %1415 }
 0x2de   : > { %v3165_v17 = vpop.permute.xlu1 %1195 }
 0x2e3   : > { %v3167_v26 = vpop.permute.xlu1 %1301 }
 0x2e4   : > { %v1317_v3 = vmul.f32 %v1924_v28, %v3167_v26  ;;  %v1933_v26 = vld [vmem:[%s3301_s3 + $0x370] sm:$0xff] }
 0x2e6   : > { %v1325_v48 = vadd.f32 %v1317_v3, %v3065_v50 }
 0x2e8   : > { %v1355_v10 = vpop.permute.xlu1 %1354 }
 0x2e9   : > { %v1373_v22 = vmul.f32 %v1931_v62, %v1355_v10 }
 0x2eb   : > { %v1381_v10 = vadd.f32 %v1373_v22, %v3001_v18  ;;  %v1926_v18 = vld [vmem:[%s3301_s3 + $0x338] sm:$0xff] }
 0x2ed   : > { %v1461_v30 = vpop.permute.xlu1 %1460 }
 0x2ee   : > { %v1485_v9 = vmul.f32 %v1945_v45, %v1461_v30  ;;  %v1205_v45 = vmul.f32 %v1910_v41, %v3165_v17  ;;  %v1420_v30 = vpop.permute.xlu0 %1419  ;;  %v1269_v17 = vadd.f32 %v1261_v39, %v3141_v13  ;;  %v1940_v13 = vld [vmem:[%s3301_s3 + $0x3a8] sm:$0xff]  ;;  %v1514_v41 = vlaneseq  ;;  %v1951_v39 = vld [vmem:[%s3304_s6] ss:$0 sm:$0xff] }
 0x2ef   : > { %v1431_v52 = vmul.f32 %v1940_v13, %v1416_v21 }
 0x2f0   : > { %v1493_v11 = vadd.f32 %v1485_v9, %v1436_v53  ;;  %v1925_v53 = vld [vmem:[%s3301_s3 + $0x330] sm:$0xff]  ;;  %v1515_v63 = vshrl.u32 %v1514_v41, 7 }
 0x2f2   : > { %v1500_v43 = vadd.f32 %v2949_v58, %v1493_v11  ;;  %v1253_v33 = vpop.permute.xlu1 %1252  ;;  %v1878_v58 = vld [vmem:[%s3301_s3 + $0x1b8] sm:$0xff]  ;;  %v1424_v61 = vpop.permute.xlu0 %1423 }
 0x2f3   : > { %v977_v38 = vmul.f32 %v1878_v58, %v2896_v32  ;;  %v1902_v32 = vld [vmem:[%s3301_s3 + $0x278] sm:$0xff]  ;;  %v1262_v46 = vmul.f32 %v1918_v42, %v1253_v33 }
 0x2f4   : > { %v1501_v49 = vadd.f32 %v1500_v43, %v1494_v60  ;;  %v1148_v34 = vmul.f32 %v1902_v32, %v2904_v44  ;;  %v1318_v60 = vmul.f32 %v1925_v53, %v2921_v35  ;;  %v1941_v35 = vld [vmem:[%s3301_s3 + $0x3b0] sm:$0xff] }
 0x2f5   : > { %v985_v55 = vadd.f32 %v977_v38, %v928_v51  ;;  %v1949_v51 = vld [vmem:[%s3301_s3 + $0x3f0] sm:$0xff]  ;;  %v1432_v2 = vmul.f32 %v1941_v35, %v1420_v30 }
 0x2f6   : > { %v1326_v0 = vadd.f32 %v1318_v60, %v1269_v17 }
 0x2f7   : > { %v1359_v56 = vpop.permute.xlu1 %1358  ;;  %v1042_v7 = vadd.f32 %v1034_v24, %v985_v55  ;;  %v1950_v55 = vld [vmem:[%s3301_s3 + $0x3f8] sm:$0xff]  ;;  %v1481_v24 = vpop.permute.xlu0 %1480 }
 0x2f8   : > { %v1374_v9 = vmul.f32 %v1932_v54, %v1359_v56  ;;  %v1490_v32 = vmul.f32 %v1950_v55, %v1481_v24  ;;  %v1516_v54 = vsub.s32 0, %v1515_v63 }
 0x2f9   : > { %v1099_v19 = vadd.f32 %v1091_v40, %v1042_v7 }
 0x2fa   : > { %v1382_v33 = vadd.f32 %v1374_v9, %v1325_v48 }
 0x2fb   : > { %v1156_v44 = vadd.f32 %v1148_v34, %v1099_v19 }
 0x2fc   : > { %v1412_v5 = vpop.permute.xlu1 %1411  ;;  %v1439_v58 = vadd.f32 %v1431_v52, %v1382_v33 }
 0x2fd   : > { %v1430_v14 = vmul.f32 %v1939_v29, %v1412_v5  ;;  %v1213_v37 = vadd.f32 %v1205_v45, %v1156_v44  ;;  %v1512_v44 = vld [vmem:[%s3302_s4] sm:$0x1] }
 0x2ff   : > { %v1438_v36 = vadd.f32 %v1430_v14, %v1381_v10  ;;  %v1270_v43 = vadd.f32 %v1262_v46, %v1213_v37 }
 0x301   : > { %v1310_v20 = vpop.permute.xlu1 %1309 }
 0x302   : > { %v1319_v11 = vmul.f32 %v1926_v18, %v1310_v20 }
 0x304   : > { %v1327_v50 = vadd.f32 %v1319_v11, %v1270_v43 }
 0x306   : > { %v1363_v12 = vpop.permute.xlu1 %1362 }
 0x307   : > { %v1375_v57 = vmul.f32 %v1933_v26, %v1363_v12  ;;  %v1960_v26 = vld [vmem:[%s3306_s8] ss:$0 sm:$0xff] }
 0x309   : > { %v1383_v31 = vadd.f32 %v1375_v57, %v1326_v0 }
 0x30b   : > { %v1469_v23 = vpop.permute.xlu1 %1468  ;;  %v1440_v7 = vadd.f32 %v1432_v2, %v1383_v31 }
 0x30c   : > { %v1487_v15 = vmul.f32 %v1947_v6, %v1469_v23 }
 0x30e   : > { %v1495_v59 = vadd.f32 %v1487_v15, %v1438_v36  ;;  %v2262_v15 = vld [vmem:[%s3305_s7 + $0x38] sm:$0xff]  }
 0x30f   : > { %2065 = vmatpush3.bf16.msra.mxu0 %v2262_v15 }
 0x310   : > { %v1502_v8 = vadd.f32 %v1501_v49, %v1495_v59  ;;  %v1367_v27 = vpop.permute.xlu1 %1366  ;;  %v1942_v49 = vld [vmem:[%s3301_s3 + $0x3b8] sm:$0xff] }
 0x311   : > { %v1376_v16 = vmul.f32 %v1934_v4, %v1367_v27  ;;  %v1433_v38 = vmul.f32 %v1942_v49, %v1424_v61 }
 0x313   : > { %v1384_v47 = vadd.f32 %v1376_v16, %v1327_v50 }
 0x315   : > { %v1473_v56 = vpop.permute.xlu1 %1472  ;;  %v1441_v40 = vadd.f32 %v1433_v38, %v1384_v47 }
 0x316   : > { %v1488_v5 = vmul.f32 %v1948_v25, %v1473_v56 }
 0x317   : > { %v1498_v12 = vadd.f32 %v1490_v32, %v1441_v40 }
 0x318   : > { %v1496_v1 = vadd.f32 %v1488_v5, %v1439_v58 }
 0x319   : > { %v1477_v20 = vpop.permute.xlu1 %1476 }
 0x31a   : > { %v1503_v62 = vadd.f32 %v1502_v8, %v1496_v1  ;;  %v1489_v29 = vmul.f32 %v1949_v51, %v1477_v20 }
 0x31c   : > { %v1497_v22 = vadd.f32 %v1489_v29, %v1440_v7 }
 0x31e   : > { %v1504_v19 = vadd.f32 %v1503_v62, %v1497_v22 }
 0x320   : > { %v1505_v14 = vadd.f32 %v1504_v19, %v1498_v12 }
 0x322   : > { %v1506_v34 = vrot.slane %v1505_v14, 4 }
 0x324   : > { %v1507_v21 = vadd.f32 %v1506_v34, %v1505_v14 }
 0x326   : > { %v1508_v28 = vrot.slane %v1507_v21, 2 }
 0x328   : > { %v1509_v6 = vadd.f32 %v1508_v28, %v1507_v21 }
 0x32a   : > { %v1510_v10 = vrot.slane %v1509_v6, 1 }
 0x32c   : > { %v1511_v42 = vadd.f32 %v1510_v10, %v1509_v6 }
 0x32e   : > { %v1513_v23 = vadd.f32 %v1512_v44, %v1511_v42 }
 0x330   : > { %v1517_v45 = vrot.slane %v1513_v23, %v1516_v54 }
 0x332   : > { %v1518_v3 = vmax.f32 %v1517_v45, 0.0 }
 0x334   : > { %v1519_v36 = vpack.c.bf16 %v1518_v3, %v1518_v3 }
 0x336   : > { %2047 = vmatmul.mubr.bf16.vlgmr.msra.gmra.mrb[0].mxu1 %v1519_v36 }
 0x409   : > { %v1625_v30 = vpop.f32.mrb[0].mxu1 }
 0x40a   : > { %v1626_v18 = vadd.f32 %v1951_v39, %v1625_v30  ;;  %v2048_v53 = vpop.f32.mrb[1].mxu1 }
 0x40b   : > { %v1628_v46 = vpop.f32.mrb[2].mxu1 }
 0x40c   : > { %v1631_v9 = vmax.f32 %v1626_v18, 0.0  ;;  %v2049_v59 = vpop.f32.mrb[3].mxu1 }
 0x40e   : > { %v1632_v17 = vpack.c.bf16 %v1631_v9, %v1631_v9 }
 0x410   : > { %2067 = vmatmul.mubr.bf16.vlgmr.msra.gmra.mrb[16].mxu0 %v1632_v17 }
 0x4e3   : > { %v1738_v4 = vpop.f32.mrb[16].mxu0 }
 0x4e4   : > { %v1739_v37 = vadd.f32 %v1960_v26, %v1738_v4  ;;  %v2068_v48 = vpop.f32.mrb[17].mxu0 }
 0x4e5   : > { %v1741_v11 = vpop.f32.mrb[18].mxu0 }
 0x4e6   : > { %1744 = vst [vmem:[%s330_s23] sm:$0xff] %v1739_v37  ;;  %v2069_v8 = vpop.f32.mrb[19].mxu0 }
 0x4e7 PF: > { %s19_s30 = sadd.s32 1, %s2269_s30  }
 0x4e8   : > { %p16_p4 = scmp.ge.s32.totalorder %s19_s30, 4  }
 0x4ea   :  { %18 = sbr.rel (!%p16_p4) target bundleno = 1 (0x1), region = 101 }

</bundles_post_ra>
